<compile_context>
chip_gen: v7x
topology: tpu7x:2x2x1
jax: 0.10.0
libtpu: 0.0.40
codegen_flags: <defaults>
</compile_context>

<pallas_src>
import functools

import jax
import jax.numpy as jnp
from jax.experimental import pallas as pl
from jax.experimental.pallas import tpu as pltpu


# ----------------------------------------------------------------------------
# Stateless in-kernel PRNG + Gaussian transform (plain VPU/EUP ops only).
# ----------------------------------------------------------------------------
def _as_i32_const(c):
    """Reinterpret a 32-bit unsigned constant as a Python int in int32 range."""
    c &= 0xFFFFFFFF
    return c - 0x100000000 if c >= 0x80000000 else c


_LB_M1 = _as_i32_const(0x7FEB352D)   # lowbias32 multipliers
_LB_M2 = _as_i32_const(0x846CA68B)
_GOLDEN = _as_i32_const(0x9E3779B9)
_MIX = _as_i32_const(0x85EBCA6B)


def _hash_lowbias32(x):
    """lowbias32 finalizer on int32 (wrapping arithmetic).

    Logical right shifts are emulated with arithmetic shift + mask so the hash
    stays entirely in int32 — no unsigned ops needed."""
    x = x ^ ((x >> 16) & 0xFFFF)
    x = x * _LB_M1
    x = x ^ ((x >> 15) & 0x1FFFF)
    x = x * _LB_M2
    x = x ^ ((x >> 16) & 0xFFFF)
    return x


def _inv_std_normal_cdf(p):
    """Acklam's rational approximation of Phi^-1(p); |err| ~1e-9 (exact in f32).

    Uses only mul/add/div, log, sqrt, minimum and select."""
    a1, a2, a3 = -3.969683028665376e+01, 2.209460984245205e+02, -2.759285104469687e+02
    a4, a5, a6 = 1.383577518672690e+02, -3.066479806614716e+01, 2.506628277459239e+00
    b1, b2, b3 = -5.447609879822406e+01, 1.615858368580409e+02, -1.556989798598866e+02
    b4, b5 = 6.680131188771972e+01, -1.328068155288572e+01
    c1, c2, c3 = -7.784894002430293e-03, -3.223964580411365e-01, -2.400758277161838e+00
    c4, c5, c6 = -2.549732539343734e+00, 4.374664141464968e+00, 2.938163982698783e+00
    d1, d2 = 7.784695709041462e-03, 3.224671290700398e-01
    d3, d4 = 2.445134137142996e+00, 3.754408661907416e+00
    p_low = 0.02425

    # Central region.
    q = p - 0.5
    r = q * q
    num = a1 * r + a2
    num = num * r + a3
    num = num * r + a4
    num = num * r + a5
    num = num * r + a6
    den = b1 * r + b2
    den = den * r + b3
    den = den * r + b4
    den = den * r + b5
    den = den * r + 1.0
    x_central = num * q / den

    # Tails, folded by symmetry so only one log / sqrt / div is evaluated.
    pt = jnp.minimum(p, 1.0 - p)                 # strictly > 0 by construction
    qt = jnp.sqrt(-2.0 * jnp.log(pt))
    numt = c1 * qt + c2
    numt = numt * qt + c3
    numt = numt * qt + c4
    numt = numt * qt + c5
    numt = numt * qt + c6
    dent = d1 * qt + d2
    dent = dent * qt + d3
    dent = dent * qt + d4
    dent = dent * qt + 1.0
    t = numt / dent                              # negative (lower-tail value)
    x_tail = jnp.where(p < 0.5, t, -t)

    return jnp.where(pt < p_low, x_tail, x_central)


# ----------------------------------------------------------------------------
# Pallas kernel: out = x + z * x * noise_ratio,  z ~ N(0, 1)
# ----------------------------------------------------------------------------
def _detector_noise_kernel(seed_ref, x_ref, o_ref, *, noise_ratio):
    block_rows, width = x_ref.shape
    xv = x_ref[...].astype(jnp.float32)          # native-dtype load, f32 math

    # Counter-based PRNG: hash the *global* flat element index with the seed,
    # so every element gets an independent draw regardless of tiling.
    row = jax.lax.broadcasted_iota(jnp.int32, (block_rows, width), 0)
    col = jax.lax.broadcasted_iota(jnp.int32, (block_rows, width), 1)
    row0 = pl.program_id(0) * block_rows         # first global row of this tile
    idx = (row0 + row) * width + col             # wraps mod 2^32; fine for hashing

    seed = seed_ref[0]
    h = _hash_lowbias32(idx ^ (seed * _GOLDEN))
    h = _hash_lowbias32(h + (seed ^ _MIX))

    # 23 random bits -> uniform p in (0, 1); never exactly 0 or 1, all exact f32.
    u23 = ((h >> 9) & 0x7FFFFF).astype(jnp.float32)
    p = (u23 + 0.5) * (1.0 / (1 << 23))

    z = _inv_std_normal_cdf(p)                   # ~ N(0, 1), |z| <= ~5.4

    # detach=True in PyTorch only affects gradients; forward math is identical.
    o_ref[...] = (xv + z * xv * noise_ratio).astype(o_ref.dtype)


# ----------------------------------------------------------------------------
# Wrapper
# ----------------------------------------------------------------------------
def _pick_width(n):
    # Prefer the widest lane-dense row that divides the element count (free
    # reshape, fully unmasked vector stores).
    for w in (2048, 1024, 512, 256, 128):
        if n % w == 0:
            return w
    return 512  # ragged tail -> small pad


@functools.partial(jax.jit, static_argnames=("noise_ratio",))
def _apply_detector_noise(x, seed, *, noise_ratio):
    orig_shape = x.shape
    n = x.size
    width = _pick_width(n)
    rows = pl.cdiv(n, width)
    padded = rows * width

    if padded == n:
        x2d = x.reshape(rows, width)
    else:
        # TODO(synk): handle the ragged tail with a second tiny pallas_call to
        # avoid this extra pad copy of the flattened tensor.
        x2d = jnp.pad(x.reshape(-1), (0, padded - n)).reshape(rows, width)

    # ~256K elements (~1 MiB of f32) per block: big lane-dense tiles keep this
    # purely memory-bound kernel near the HBM roofline; double-buffered in/out
    # plus f32 temporaries fit comfortably in VMEM on v5e / v6e / v7x.
    block_rows = max(8, (256 * 1024) // width)
    if rows <= block_rows:
        block_rows = rows                        # full-extent block (always legal)
    else:
        block_rows = (block_rows // 8) * 8       # keep (8, 128) tiling constraint
    grid = (pl.cdiv(rows, block_rows),)

    seed_arr = jnp.reshape(seed.astype(jnp.int32), (1,))
    kernel = functools.partial(_detector_noise_kernel, noise_ratio=float(noise_ratio))

    out2d = pl.pallas_call(
        kernel,
        out_shape=jax.ShapeDtypeStruct((rows, width), x.dtype),
        grid_spec=pltpu.PrefetchScalarGridSpec(
            num_scalar_prefetch=1,               # seed lives in SMEM
            grid=grid,
            in_specs=[pl.BlockSpec((block_rows, width), lambda i, seed_ref: (i, 0))],
            out_specs=pl.BlockSpec((block_rows, width), lambda i, seed_ref: (i, 0)),
        ),
        # Operand 1 (x2d) aliases output 0: elementwise, shape/dtype preserving,
        # so no separate HBM output allocation is needed.
        input_output_aliases={1: 0},
        compiler_params=pltpu.CompilerParams(
            dimension_semantics=("parallel",),   # shard grid across TCs on v7x
            vmem_limit_bytes=32 * 1024 * 1024,   # safe on v5e/v6e/v7x
        ),
    )(seed_arr, x2d)

    out = out2d
    if padded != n:
        out = out.reshape(-1)[:n]
    return out.reshape(orig_shape)


def detector_noise(x, *, noise_ratio=0.0, training=True, seed=0, detach=True):
    """Forward pass of the PyTorch DetectorNoise module (Gaussian noise whose
    std is proportional to each pixel's magnitude)."""
    del detach  # only affects gradients in PyTorch; forward math is identical
    assert 0.0 <= noise_ratio < 1.0
    if (not training) or noise_ratio == 0.0:
        return x
    return _apply_detector_noise(
        x, jnp.asarray(seed, dtype=jnp.int32), noise_ratio=float(noise_ratio)
    )


# ----------------------------------------------------------------------------
# Demo
# ----------------------------------------------------------------------------
if __name__ == "__main__":
    key = jax.random.PRNGKey(0)
    # NCHW input, small shapes: batch=2, channels=4, spatial=16x16
    x = jax.random.normal(key, (2, 4, 16, 16), dtype=jnp.float32)

    noise_ratio = 0.1
    y = detector_noise(x, noise_ratio=noise_ratio, training=True, seed=1234)
    y = jax.block_until_ready(y)

    assert y.shape == x.shape and y.dtype == x.dtype

    # Noise is pixel-proportional: (y - x) / x == z * noise_ratio with z ~ N(0,1)
    # (|z| capped at ~5.4 by the 23-bit uniform), so these checks are safe and
    # deterministic for the fixed seed.
    denom = jnp.where(x == 0, 1.0, x)
    rel = (y - x) / denom
    assert float(jnp.max(jnp.abs(rel))) < 6.0 * noise_ratio
    z_std = float(jnp.std(rel)) / noise_ratio
    z_mean = float(jnp.mean(rel)) / noise_ratio
    assert 0.7 < z_std < 1.3, z_std
    assert abs(z_mean) < 0.3, z_mean

    # Eval mode / inactive module is identity.
    y_eval = detector_noise(x, noise_ratio=noise_ratio, training=False)
    assert bool(jnp.all(y_eval == x))
    y_inactive = detector_noise(x, noise_ratio=0.0, training=True)
    assert bool(jnp.all(y_inactive == x))

    print("KERNEL_OK")
</pallas_src>

<mosaic_0001>
module attributes {stable_mosaic.version = 11 : i64} {
  func.func @_detector_noise_kernel(%arg0: i32, %arg1: memref<1xi32, #tpu.memory_space<smem>>, %arg2: memref<1x2048xf32, #tpu.memory_space<vmem>>, %arg3: memref<1x2048xf32, #tpu.memory_space<vmem>>) attributes {dimension_semantics = [#tpu.dimension_semantics<parallel>], iteration_bounds = array<i64: 1>, scalar_prefetch = 1 : i64, scratch_operands = 0 : i64, tpu.core_type = #tpu.core_type<tc>, window_params = [{transform_indices = @transform_0, window_bounds = array<i64: 1, 2048>}, {transform_indices = @transform_1, window_bounds = array<i64: 1, 2048>}]} {
    %c0 = arith.constant 0 : index
    %c0_0 = arith.constant 0 : index
    %0 = vector.load %arg2[%c0, %c0_0] : memref<1x2048xf32, #tpu.memory_space<vmem>>, vector<1x2048xf32>
    %1 = tpu.iota {dimensions = array<i32: 0>} : vector<1x2048xi32>
    %2 = tpu.iota {dimensions = array<i32: 1>} : vector<1x2048xi32>
    %c1_i32 = arith.constant 1 : i32
    %3 = arith.muli %arg0, %c1_i32 : i32
    %4 = vector.broadcast %3 : i32 to vector<1x2048xi32>
    %5 = arith.addi %4, %1 : vector<1x2048xi32>
    %c2048_i32 = arith.constant 2048 : i32
    %6 = vector.broadcast %c2048_i32 : i32 to vector<1x2048xi32>
    %7 = arith.muli %5, %6 : vector<1x2048xi32>
    %8 = arith.addi %7, %2 : vector<1x2048xi32>
    %c0_1 = arith.constant 0 : index
    %9 = memref.load %arg1[%c0_1] : memref<1xi32, #tpu.memory_space<smem>>
    %c-1640531527_i32 = arith.constant -1640531527 : i32
    %10 = arith.muli %9, %c-1640531527_i32 : i32
    %11 = vector.broadcast %10 : i32 to vector<1x2048xi32>
    %12 = arith.xori %8, %11 : vector<1x2048xi32>
    %c16_i32 = arith.constant 16 : i32
    %13 = vector.broadcast %c16_i32 : i32 to vector<1x2048xi32>
    %14 = arith.shrsi %12, %13 : vector<1x2048xi32>
    %c65535_i32 = arith.constant 65535 : i32
    %15 = vector.broadcast %c65535_i32 : i32 to vector<1x2048xi32>
    %16 = arith.andi %14, %15 : vector<1x2048xi32>
    %17 = arith.xori %12, %16 : vector<1x2048xi32>
    %c2146121005_i32 = arith.constant 2146121005 : i32
    %18 = vector.broadcast %c2146121005_i32 : i32 to vector<1x2048xi32>
    %19 = arith.muli %17, %18 : vector<1x2048xi32>
    %c15_i32 = arith.constant 15 : i32
    %20 = vector.broadcast %c15_i32 : i32 to vector<1x2048xi32>
    %21 = arith.shrsi %19, %20 : vector<1x2048xi32>
    %c131071_i32 = arith.constant 131071 : i32
    %22 = vector.broadcast %c131071_i32 : i32 to vector<1x2048xi32>
    %23 = arith.andi %21, %22 : vector<1x2048xi32>
    %24 = arith.xori %19, %23 : vector<1x2048xi32>
    %c-2073254261_i32 = arith.constant -2073254261 : i32
    %25 = vector.broadcast %c-2073254261_i32 : i32 to vector<1x2048xi32>
    %26 = arith.muli %24, %25 : vector<1x2048xi32>
    %c16_i32_2 = arith.constant 16 : i32
    %27 = vector.broadcast %c16_i32_2 : i32 to vector<1x2048xi32>
    %28 = arith.shrsi %26, %27 : vector<1x2048xi32>
    %c65535_i32_3 = arith.constant 65535 : i32
    %29 = vector.broadcast %c65535_i32_3 : i32 to vector<1x2048xi32>
    %30 = arith.andi %28, %29 : vector<1x2048xi32>
    %31 = arith.xori %26, %30 : vector<1x2048xi32>
    %c-2048144789_i32 = arith.constant -2048144789 : i32
    %32 = arith.xori %9, %c-2048144789_i32 : i32
    %33 = vector.broadcast %32 : i32 to vector<1x2048xi32>
    %34 = arith.addi %31, %33 : vector<1x2048xi32>
    %c16_i32_4 = arith.constant 16 : i32
    %35 = vector.broadcast %c16_i32_4 : i32 to vector<1x2048xi32>
    %36 = arith.shrsi %34, %35 : vector<1x2048xi32>
    %c65535_i32_5 = arith.constant 65535 : i32
    %37 = vector.broadcast %c65535_i32_5 : i32 to vector<1x2048xi32>
    %38 = arith.andi %36, %37 : vector<1x2048xi32>
    %39 = arith.xori %34, %38 : vector<1x2048xi32>
    %c2146121005_i32_6 = arith.constant 2146121005 : i32
    %40 = vector.broadcast %c2146121005_i32_6 : i32 to vector<1x2048xi32>
    %41 = arith.muli %39, %40 : vector<1x2048xi32>
    %c15_i32_7 = arith.constant 15 : i32
    %42 = vector.broadcast %c15_i32_7 : i32 to vector<1x2048xi32>
    %43 = arith.shrsi %41, %42 : vector<1x2048xi32>
    %c131071_i32_8 = arith.constant 131071 : i32
    %44 = vector.broadcast %c131071_i32_8 : i32 to vector<1x2048xi32>
    %45 = arith.andi %43, %44 : vector<1x2048xi32>
    %46 = arith.xori %41, %45 : vector<1x2048xi32>
    %c-2073254261_i32_9 = arith.constant -2073254261 : i32
    %47 = vector.broadcast %c-2073254261_i32_9 : i32 to vector<1x2048xi32>
    %48 = arith.muli %46, %47 : vector<1x2048xi32>
    %c16_i32_10 = arith.constant 16 : i32
    %49 = vector.broadcast %c16_i32_10 : i32 to vector<1x2048xi32>
    %50 = arith.shrsi %48, %49 : vector<1x2048xi32>
    %c65535_i32_11 = arith.constant 65535 : i32
    %51 = vector.broadcast %c65535_i32_11 : i32 to vector<1x2048xi32>
    %52 = arith.andi %50, %51 : vector<1x2048xi32>
    %53 = arith.xori %48, %52 : vector<1x2048xi32>
    %c9_i32 = arith.constant 9 : i32
    %54 = vector.broadcast %c9_i32 : i32 to vector<1x2048xi32>
    %55 = arith.shrsi %53, %54 : vector<1x2048xi32>
    %c8388607_i32 = arith.constant 8388607 : i32
    %56 = vector.broadcast %c8388607_i32 : i32 to vector<1x2048xi32>
    %57 = arith.andi %55, %56 : vector<1x2048xi32>
    %58 = arith.sitofp %57 : vector<1x2048xi32> to vector<1x2048xf32>
    %cst = arith.constant 5.000000e-01 : f32
    %59 = vector.broadcast %cst : f32 to vector<1x2048xf32>
    %60 = arith.addf %58, %59 : vector<1x2048xf32>
    %cst_12 = arith.constant 1.1920929E-7 : f32
    %61 = vector.broadcast %cst_12 : f32 to vector<1x2048xf32>
    %62 = arith.mulf %60, %61 : vector<1x2048xf32>
    %cst_13 = arith.constant 5.000000e-01 : f32
    %63 = vector.broadcast %cst_13 : f32 to vector<1x2048xf32>
    %64 = arith.subf %62, %63 : vector<1x2048xf32>
    %65 = arith.mulf %64, %64 : vector<1x2048xf32>
    %cst_14 = arith.constant -39.6968307 : f32
    %66 = vector.broadcast %cst_14 : f32 to vector<1x2048xf32>
    %67 = arith.mulf %66, %65 : vector<1x2048xf32>
    %cst_15 = arith.constant 220.946106 : f32
    %68 = vector.broadcast %cst_15 : f32 to vector<1x2048xf32>
    %69 = arith.addf %67, %68 : vector<1x2048xf32>
    %70 = arith.mulf %69, %65 : vector<1x2048xf32>
    %cst_16 = arith.constant -275.928497 : f32
    %71 = vector.broadcast %cst_16 : f32 to vector<1x2048xf32>
    %72 = arith.addf %70, %71 : vector<1x2048xf32>
    %73 = arith.mulf %72, %65 : vector<1x2048xf32>
    %cst_17 = arith.constant 138.357758 : f32
    %74 = vector.broadcast %cst_17 : f32 to vector<1x2048xf32>
    %75 = arith.addf %73, %74 : vector<1x2048xf32>
    %76 = arith.mulf %75, %65 : vector<1x2048xf32>
    %cst_18 = arith.constant -30.6647987 : f32
    %77 = vector.broadcast %cst_18 : f32 to vector<1x2048xf32>
    %78 = arith.addf %76, %77 : vector<1x2048xf32>
    %79 = arith.mulf %78, %65 : vector<1x2048xf32>
    %cst_19 = arith.constant 2.50662827 : f32
    %80 = vector.broadcast %cst_19 : f32 to vector<1x2048xf32>
    %81 = arith.addf %79, %80 : vector<1x2048xf32>
    %cst_20 = arith.constant -54.4760971 : f32
    %82 = vector.broadcast %cst_20 : f32 to vector<1x2048xf32>
    %83 = arith.mulf %82, %65 : vector<1x2048xf32>
    %cst_21 = arith.constant 161.585831 : f32
    %84 = vector.broadcast %cst_21 : f32 to vector<1x2048xf32>
    %85 = arith.addf %83, %84 : vector<1x2048xf32>
    %86 = arith.mulf %85, %65 : vector<1x2048xf32>
    %cst_22 = arith.constant -155.698975 : f32
    %87 = vector.broadcast %cst_22 : f32 to vector<1x2048xf32>
    %88 = arith.addf %86, %87 : vector<1x2048xf32>
    %89 = arith.mulf %88, %65 : vector<1x2048xf32>
    %cst_23 = arith.constant 66.8013153 : f32
    %90 = vector.broadcast %cst_23 : f32 to vector<1x2048xf32>
    %91 = arith.addf %89, %90 : vector<1x2048xf32>
    %92 = arith.mulf %91, %65 : vector<1x2048xf32>
    %cst_24 = arith.constant -13.2806816 : f32
    %93 = vector.broadcast %cst_24 : f32 to vector<1x2048xf32>
    %94 = arith.addf %92, %93 : vector<1x2048xf32>
    %95 = arith.mulf %94, %65 : vector<1x2048xf32>
    %cst_25 = arith.constant 1.000000e+00 : f32
    %96 = vector.broadcast %cst_25 : f32 to vector<1x2048xf32>
    %97 = arith.addf %95, %96 : vector<1x2048xf32>
    %98 = arith.mulf %81, %64 : vector<1x2048xf32>
    %99 = arith.divf %98, %97 : vector<1x2048xf32>
    %cst_26 = arith.constant 1.000000e+00 : f32
    %100 = vector.broadcast %cst_26 : f32 to vector<1x2048xf32>
    %101 = arith.subf %100, %62 : vector<1x2048xf32>
    %102 = arith.minimumf %62, %101 : vector<1x2048xf32>
    %103 = math.log %102 : vector<1x2048xf32>
    %cst_27 = arith.constant -2.000000e+00 : f32
    %104 = vector.broadcast %cst_27 : f32 to vector<1x2048xf32>
    %105 = arith.mulf %104, %103 : vector<1x2048xf32>
    %106 = math.sqrt %105 : vector<1x2048xf32>
    %cst_28 = arith.constant -0.0077848942 : f32
    %107 = vector.broadcast %cst_28 : f32 to vector<1x2048xf32>
    %108 = arith.mulf %107, %106 : vector<1x2048xf32>
    %cst_29 = arith.constant -0.322396457 : f32
    %109 = vector.broadcast %cst_29 : f32 to vector<1x2048xf32>
    %110 = arith.addf %108, %109 : vector<1x2048xf32>
    %111 = arith.mulf %110, %106 : vector<1x2048xf32>
    %cst_30 = arith.constant -2.40075827 : f32
    %112 = vector.broadcast %cst_30 : f32 to vector<1x2048xf32>
    %113 = arith.addf %111, %112 : vector<1x2048xf32>
    %114 = arith.mulf %113, %106 : vector<1x2048xf32>
    %cst_31 = arith.constant -2.54973245 : f32
    %115 = vector.broadcast %cst_31 : f32 to vector<1x2048xf32>
    %116 = arith.addf %114, %115 : vector<1x2048xf32>
    %117 = arith.mulf %116, %106 : vector<1x2048xf32>
    %cst_32 = arith.constant 4.37466431 : f32
    %118 = vector.broadcast %cst_32 : f32 to vector<1x2048xf32>
    %119 = arith.addf %117, %118 : vector<1x2048xf32>
    %120 = arith.mulf %119, %106 : vector<1x2048xf32>
    %cst_33 = arith.constant 2.938164 : f32
    %121 = vector.broadcast %cst_33 : f32 to vector<1x2048xf32>
    %122 = arith.addf %120, %121 : vector<1x2048xf32>
    %cst_34 = arith.constant 0.00778469583 : f32
    %123 = vector.broadcast %cst_34 : f32 to vector<1x2048xf32>
    %124 = arith.mulf %123, %106 : vector<1x2048xf32>
    %cst_35 = arith.constant 0.322467119 : f32
    %125 = vector.broadcast %cst_35 : f32 to vector<1x2048xf32>
    %126 = arith.addf %124, %125 : vector<1x2048xf32>
    %127 = arith.mulf %126, %106 : vector<1x2048xf32>
    %cst_36 = arith.constant 2.44513416 : f32
    %128 = vector.broadcast %cst_36 : f32 to vector<1x2048xf32>
    %129 = arith.addf %127, %128 : vector<1x2048xf32>
    %130 = arith.mulf %129, %106 : vector<1x2048xf32>
    %cst_37 = arith.constant 3.7544086 : f32
    %131 = vector.broadcast %cst_37 : f32 to vector<1x2048xf32>
    %132 = arith.addf %130, %131 : vector<1x2048xf32>
    %133 = arith.mulf %132, %106 : vector<1x2048xf32>
    %cst_38 = arith.constant 1.000000e+00 : f32
    %134 = vector.broadcast %cst_38 : f32 to vector<1x2048xf32>
    %135 = arith.addf %133, %134 : vector<1x2048xf32>
    %136 = arith.divf %122, %135 : vector<1x2048xf32>
    %cst_39 = arith.constant 5.000000e-01 : f32
    %137 = vector.broadcast %cst_39 : f32 to vector<1x2048xf32>
    %138 = arith.cmpf olt, %62, %137 : vector<1x2048xf32>
    %cst_40 = arith.constant 0.000000e+00 : f32
    %139 = vector.broadcast %cst_40 : f32 to vector<1x2048xf32>
    %140 = arith.subf %139, %136 : vector<1x2048xf32>
    %141 = arith.select %138, %136, %140 : vector<1x2048xi1>, vector<1x2048xf32>
    %cst_41 = arith.constant 2.425000e-02 : f32
    %142 = vector.broadcast %cst_41 : f32 to vector<1x2048xf32>
    %143 = arith.cmpf olt, %102, %142 : vector<1x2048xf32>
    %144 = arith.select %143, %141, %99 : vector<1x2048xi1>, vector<1x2048xf32>
    %145 = arith.mulf %144, %0 : vector<1x2048xf32>
    %cst_42 = arith.constant 1.000000e-01 : f32
    %146 = vector.broadcast %cst_42 : f32 to vector<1x2048xf32>
    %147 = arith.mulf %145, %146 : vector<1x2048xf32>
    %148 = arith.addf %0, %147 : vector<1x2048xf32>
    %c0_43 = arith.constant 0 : index
    %c0_44 = arith.constant 0 : index
    %149 = vector.load %arg3[%c0_43, %c0_44] : memref<1x2048xf32, #tpu.memory_space<vmem>>, vector<1x2048xf32>
    tpu.vector_store %arg3[%c0_43, %c0_44], %148 {strides = array<i32>} : memref<1x2048xf32, #tpu.memory_space<vmem>>, vector<1x2048xf32>,
    return
  }
  func.func @transform_0(%arg0: i32, %arg1: memref<1xi32, #tpu.memory_space<smem>>) -> (i32, i32) {
    %c0_i32 = arith.constant 0 : i32
    %c0_i32_0 = arith.constant 0 : i32
    return %arg0, %c0_i32 : i32, i32
  }
  func.func @transform_1(%arg0: i32, %arg1: memref<1xi32, #tpu.memory_space<smem>>) -> (i32, i32) {
    %c0_i32 = arith.constant 0 : i32
    %c0_i32_0 = arith.constant 0 : i32
    return %arg0, %c0_i32 : i32, i32
  }
}

</mosaic_0001>

<bundles_post_ra>
// kernel: _apply_detector_noise.1
= control target key start
LH: loop header
LB: loop body
LE: loop exit
PB: predicated region body
PF: predicated region fallthrough
CT: control target
= control target key end

     0   :  { %v12_v0 = vlaneseq  ;;  %s3217_s0 = inlined_call_operand.<no memory space> [shape: s32[1], index: 0, kind: input, shape index: {}]   ;;  %s3218_s1 = inlined_call_operand.vmem [shape: f32[1,2048], index: 1, kind: input, shape index: {}, may-alias: {1,2}]   ;;  %s3219_s2 = inlined_call_operand.vmem [shape: f32[1,2048], index: 2, kind: output, shape index: {}, may-alias: {1,2}]  }
   0x1   :  { %s51_s11 = smul.u32 2654435769, %s3217_s0  ;;  %s245_s14 = sxor.u32 2246822507, %s3217_s0 }
   0x2   :  { %v2022_v1 = vshrl.u32 %v12_v0, 7  ;;  %v15_v2 = vand.u32 127, %v12_v0  ;;  %v2031_v10 = vstv %s245_s14 }
   0x3   :  { %v52_v14 = vstv %s51_s11 }
   0x4   :  { %3282 = vst [vmem:[#allocation4_spill] sm:$0xff] %v2022_v1  ;;  %v33_v3 = vmul.u32 2048, %v2022_v1  ;;  %v16_v4 = vadd.s32 128, %v15_v2  ;;  %v17_v5 = vadd.s32 256, %v15_v2  ;;  %v18_v6 = vadd.s32 384, %v15_v2 }
   0x5   :  { %v19_v7 = vadd.s32 512, %v15_v2  ;;  %v20_v8 = vadd.s32 640, %v15_v2  ;;  %v21_v9 = vadd.s32 768, %v15_v2  ;;  %v22_v11 = vadd.s32 896, %v15_v2 }
   0x6   :  { %v23_v12 = vadd.s32 1024, %v15_v2  ;;  %v34_v13 = vadd.s32 %v33_v3, %v15_v2  ;;  %v24_v15 = vadd.s32 1152, %v15_v2  ;;  %v25_v16 = vadd.s32 1280, %v15_v2 }
   0x7   :  { %v35_v17 = vadd.s32 %v33_v3, %v16_v4  ;;  %v36_v18 = vadd.s32 %v33_v3, %v17_v5  ;;  %v26_v19 = vadd.s32 1408, %v15_v2  ;;  %v27_v20 = vadd.s32 1536, %v15_v2 }
   0x8   :  { %v37_v21 = vadd.s32 %v33_v3, %v18_v6  ;;  %v38_v22 = vadd.s32 %v33_v3, %v19_v7  ;;  %v28_v23 = vadd.s32 1664, %v15_v2  ;;  %v29_v24 = vadd.s32 1792, %v15_v2 }
   0x9   :  { %v39_v25 = vadd.s32 %v33_v3, %v20_v8  ;;  %v40_v26 = vadd.s32 %v33_v3, %v21_v9  ;;  %v30_v27 = vadd.s32 1920, %v15_v2  ;;  %v41_v28 = vadd.s32 %v33_v3, %v22_v11 }
   0xa   :  { %v42_v29 = vadd.s32 %v33_v3, %v23_v12  ;;  %v53_v30 = vxor.u32 %v52_v14, %v34_v13  ;;  %v43_v31 = vadd.s32 %v33_v3, %v24_v15  ;;  %v44_v32 = vadd.s32 %v33_v3, %v25_v16 }
   0xb   :  { %v54_v33 = vxor.u32 %v52_v14, %v35_v17  ;;  %v55_v34 = vxor.u32 %v52_v14, %v36_v18  ;;  %v45_v35 = vadd.s32 %v33_v3, %v26_v19  ;;  %v46_v36 = vadd.s32 %v33_v3, %v27_v20 }
   0xc   :  { %v56_v37 = vxor.u32 %v52_v14, %v37_v21  ;;  %v57_v38 = vxor.u32 %v52_v14, %v38_v22  ;;  %v47_v39 = vadd.s32 %v33_v3, %v28_v23  ;;  %v48_v40 = vadd.s32 %v33_v3, %v29_v24 }
   0xd   :  { %v58_v41 = vxor.u32 %v52_v14, %v39_v25  ;;  %v59_v42 = vxor.u32 %v52_v14, %v40_v26  ;;  %v49_v43 = vadd.s32 %v33_v3, %v30_v27  ;;  %v60_v44 = vxor.u32 %v52_v14, %v41_v28 }
   0xe   :  { %v61_v45 = vxor.u32 %v52_v14, %v42_v29  ;;  %v1749_v46 = vshrl.u32 %v53_v30, 16  ;;  %v62_v47 = vxor.u32 %v52_v14, %v43_v31  ;;  %v63_v48 = vxor.u32 %v52_v14, %v44_v32 }
   0xf   :  { %v1750_v49 = vshrl.u32 %v54_v33, 16  ;;  %v1751_v50 = vshrl.u32 %v55_v34, 16  ;;  %v64_v51 = vxor.u32 %v52_v14, %v45_v35  ;;  %v65_v52 = vxor.u32 %v52_v14, %v46_v36 }
  0x10   :  { %v1752_v53 = vshrl.u32 %v56_v37, 16  ;;  %v1753_v54 = vshrl.u32 %v57_v38, 16  ;;  %v66_v55 = vxor.u32 %v52_v14, %v47_v39  ;;  %v67_v56 = vxor.u32 %v52_v14, %v48_v40 }
  0x11   :  { %v1754_v57 = vshrl.u32 %v58_v41, 16  ;;  %v1755_v58 = vshrl.u32 %v59_v42, 16  ;;  %v68_v59 = vxor.u32 %v52_v14, %v49_v43  ;;  %v1756_v60 = vshrl.u32 %v60_v44, 16 }
  0x12   :  { %v1757_v61 = vshrl.u32 %v61_v45, 16  ;;  %v101_v62 = vxor.u32 %v1749_v46, %v53_v30  ;;  %v1758_v63 = vshrl.u32 %v62_v47, 16  ;;  %v1759_v0 = vshrl.u32 %v63_v48, 16 }
  0x13   :  { %v102_v2 = vxor.u32 %v1750_v49, %v54_v33  ;;  %v103_v3 = vxor.u32 %v1751_v50, %v55_v34  ;;  %v1760_v4 = vshrl.u32 %v64_v51, 16  ;;  %v1761_v5 = vshrl.u32 %v65_v52, 16 }
  0x14   :  { %v104_v6 = vxor.u32 %v1752_v53, %v56_v37  ;;  %v105_v7 = vxor.u32 %v1753_v54, %v57_v38  ;;  %v1762_v8 = vshrl.u32 %v66_v55, 16  ;;  %v1763_v9 = vshrl.u32 %v67_v56, 16 }
  0x15   :  { %v106_v11 = vxor.u32 %v1754_v57, %v58_v41  ;;  %v107_v12 = vxor.u32 %v1755_v58, %v59_v42  ;;  %v1764_v13 = vshrl.u32 %v68_v59, 16  ;;  %v108_v15 = vxor.u32 %v1756_v60, %v60_v44 }
  0x16   :  { %v109_v16 = vxor.u32 %v1757_v61, %v61_v45  ;;  %v117_v17 = vmul.u32 2146121005, %v101_v62  ;;  %v110_v14 = vxor.u32 %v1758_v63, %v62_v47  ;;  %v111_v18 = vxor.u32 %v1759_v0, %v63_v48 }
  0x17   :  { %v118_v19 = vmul.u32 2146121005, %v102_v2  ;;  %v119_v20 = vmul.u32 2146121005, %v103_v3  ;;  %v112_v21 = vxor.u32 %v1760_v4, %v64_v51  ;;  %v113_v22 = vxor.u32 %v1761_v5, %v65_v52 }
  0x18   :  { %v120_v23 = vmul.u32 2146121005, %v104_v6  ;;  %v121_v24 = vmul.u32 2146121005, %v105_v7  ;;  %v114_v25 = vxor.u32 %v1762_v8, %v66_v55  ;;  %v115_v26 = vxor.u32 %v1763_v9, %v67_v56 }
  0x19   :  { %v122_v27 = vmul.u32 2146121005, %v106_v11  ;;  %v123_v28 = vmul.u32 2146121005, %v107_v12  ;;  %v116_v29 = vxor.u32 %v1764_v13, %v68_v59  ;;  %v1765_v32 = vshrl.u32 %v117_v17, 15 }
  0x1a   :  { %v124_v30 = vmul.u32 2146121005, %v108_v15  ;;  %v125_v31 = vmul.u32 2146121005, %v109_v16  ;;  %v1766_v35 = vshrl.u32 %v118_v19, 15  ;;  %v1767_v36 = vshrl.u32 %v119_v20, 15 }
  0x1b   :  { %v126_v33 = vmul.u32 2146121005, %v110_v14  ;;  %v127_v34 = vmul.u32 2146121005, %v111_v18  ;;  %v1768_v39 = vshrl.u32 %v120_v23, 15  ;;  %v1769_v40 = vshrl.u32 %v121_v24, 15 }
  0x1c   :  { %v128_v37 = vmul.u32 2146121005, %v112_v21  ;;  %v129_v38 = vmul.u32 2146121005, %v113_v22  ;;  %v1770_v43 = vshrl.u32 %v122_v27, 15  ;;  %v1771_v44 = vshrl.u32 %v123_v28, 15 }
  0x1d   :  { %v130_v41 = vmul.u32 2146121005, %v114_v25  ;;  %v131_v42 = vmul.u32 2146121005, %v115_v26  ;;  %v1772_v46 = vshrl.u32 %v124_v30, 15  ;;  %v1773_v47 = vshrl.u32 %v125_v31, 15 }
  0x1e   :  { %v132_v45 = vmul.u32 2146121005, %v116_v29  ;;  %v165_v48 = vxor.u32 %v1765_v32, %v117_v17  ;;  %v1774_v49 = vshrl.u32 %v126_v33, 15  ;;  %v1775_v50 = vshrl.u32 %v127_v34, 15 }
  0x1f   :  { %v166_v51 = vxor.u32 %v1766_v35, %v118_v19  ;;  %v167_v52 = vxor.u32 %v1767_v36, %v119_v20  ;;  %v1776_v53 = vshrl.u32 %v128_v37, 15  ;;  %v1777_v54 = vshrl.u32 %v129_v38, 15 }
  0x20   :  { %v168_v55 = vxor.u32 %v1768_v39, %v120_v23  ;;  %v169_v56 = vxor.u32 %v1769_v40, %v121_v24  ;;  %v1778_v57 = vshrl.u32 %v130_v41, 15  ;;  %v1779_v58 = vshrl.u32 %v131_v42, 15 }
  0x21   :  { %v170_v59 = vxor.u32 %v1770_v43, %v122_v27  ;;  %v171_v60 = vxor.u32 %v1771_v44, %v123_v28  ;;  %v1780_v61 = vshrl.u32 %v132_v45, 15  ;;  %v172_v62 = vxor.u32 %v1772_v46, %v124_v30 }
  0x22   :  { %v173_v63 = vxor.u32 %v1773_v47, %v125_v31  ;;  %v181_v0 = vmul.u32 2221713035, %v165_v48  ;;  %v174_v2 = vxor.u32 %v1774_v49, %v126_v33  ;;  %v175_v3 = vxor.u32 %v1775_v50, %v127_v34 }
  0x23   :  { %v182_v4 = vmul.u32 2221713035, %v166_v51  ;;  %v183_v5 = vmul.u32 2221713035, %v167_v52  ;;  %v176_v6 = vxor.u32 %v1776_v53, %v128_v37  ;;  %v177_v7 = vxor.u32 %v1777_v54, %v129_v38 }
  0x24   :  { %v184_v8 = vmul.u32 2221713035, %v168_v55  ;;  %v185_v9 = vmul.u32 2221713035, %v169_v56  ;;  %v178_v11 = vxor.u32 %v1778_v57, %v130_v41  ;;  %v179_v12 = vxor.u32 %v1779_v58, %v131_v42 }
  0x25   :  { %v186_v13 = vmul.u32 2221713035, %v170_v59  ;;  %v187_v15 = vmul.u32 2221713035, %v171_v60  ;;  %v180_v16 = vxor.u32 %v1780_v61, %v132_v45  ;;  %v1781_v18 = vshrl.u32 %v181_v0, 16 }
  0x26   :  { %v188_v17 = vmul.u32 2221713035, %v172_v62  ;;  %v189_v14 = vmul.u32 2221713035, %v173_v63  ;;  %v1782_v21 = vshrl.u32 %v182_v4, 16  ;;  %v1783_v22 = vshrl.u32 %v183_v5, 16 }
  0x27   :  { %v190_v19 = vmul.u32 2221713035, %v174_v2  ;;  %v191_v20 = vmul.u32 2221713035, %v175_v3  ;;  %v1784_v25 = vshrl.u32 %v184_v8, 16  ;;  %v1785_v26 = vshrl.u32 %v185_v9, 16 }
  0x28   :  { %v192_v23 = vmul.u32 2221713035, %v176_v6  ;;  %v193_v24 = vmul.u32 2221713035, %v177_v7  ;;  %v1786_v29 = vshrl.u32 %v186_v13, 16  ;;  %v1787_v30 = vshrl.u32 %v187_v15, 16 }
  0x29   :  { %v194_v27 = vmul.u32 2221713035, %v178_v11  ;;  %v195_v28 = vmul.u32 2221713035, %v179_v12  ;;  %v1788_v32 = vshrl.u32 %v188_v17, 16  ;;  %v1789_v33 = vshrl.u32 %v189_v14, 16 }
  0x2a   :  { %v196_v31 = vmul.u32 2221713035, %v180_v16  ;;  %v229_v34 = vxor.u32 %v1781_v18, %v181_v0  ;;  %v1790_v35 = vshrl.u32 %v190_v19, 16  ;;  %v1791_v36 = vshrl.u32 %v191_v20, 16 }
  0x2b   :  { %v230_v37 = vxor.u32 %v1782_v21, %v182_v4  ;;  %v231_v38 = vxor.u32 %v1783_v22, %v183_v5  ;;  %v1792_v39 = vshrl.u32 %v192_v23, 16  ;;  %v1793_v40 = vshrl.u32 %v193_v24, 16 }
  0x2c   :  { %v232_v41 = vxor.u32 %v1784_v25, %v184_v8  ;;  %v233_v42 = vxor.u32 %v1785_v26, %v185_v9  ;;  %v1794_v43 = vshrl.u32 %v194_v27, 16  ;;  %v1795_v44 = vshrl.u32 %v195_v28, 16 }
  0x2d   :  { %v234_v45 = vxor.u32 %v1786_v29, %v186_v13  ;;  %v235_v46 = vxor.u32 %v1787_v30, %v187_v15  ;;  %v1796_v47 = vshrl.u32 %v196_v31, 16  ;;  %v236_v48 = vxor.u32 %v1788_v32, %v188_v17 }
  0x2e   :  { %v237_v49 = vxor.u32 %v1789_v33, %v189_v14  ;;  %v247_v50 = vadd.s32 %v2031_v10, %v229_v34  ;;  %v238_v51 = vxor.u32 %v1790_v35, %v190_v19  ;;  %v239_v52 = vxor.u32 %v1791_v36, %v191_v20 }
  0x2f   :  { %v248_v53 = vadd.s32 %v2031_v10, %v230_v37  ;;  %v249_v54 = vadd.s32 %v2031_v10, %v231_v38  ;;  %v240_v55 = vxor.u32 %v1792_v39, %v192_v23  ;;  %v241_v56 = vxor.u32 %v1793_v40, %v193_v24 }
  0x30   :  { %v250_v57 = vadd.s32 %v2031_v10, %v232_v41  ;;  %v251_v58 = vadd.s32 %v2031_v10, %v233_v42  ;;  %v242_v59 = vxor.u32 %v1794_v43, %v194_v27  ;;  %v243_v60 = vxor.u32 %v1795_v44, %v195_v28 }
  0x31   :  { %v252_v61 = vadd.s32 %v2031_v10, %v234_v45  ;;  %v253_v62 = vadd.s32 %v2031_v10, %v235_v46  ;;  %v244_v63 = vxor.u32 %v1796_v47, %v196_v31  ;;  %v254_v0 = vadd.s32 %v2031_v10, %v236_v48 }
  0x32   :  { %v255_v2 = vadd.s32 %v2031_v10, %v237_v49  ;;  %v1797_v3 = vshrl.u32 %v247_v50, 16  ;;  %v256_v4 = vadd.s32 %v2031_v10, %v238_v51  ;;  %v257_v5 = vadd.s32 %v2031_v10, %v239_v52 }
  0x33   :  { %v1798_v6 = vshrl.u32 %v248_v53, 16  ;;  %v1799_v7 = vshrl.u32 %v249_v54, 16  ;;  %v258_v8 = vadd.s32 %v2031_v10, %v240_v55  ;;  %v259_v9 = vadd.s32 %v2031_v10, %v241_v56 }
  0x34   :  { %v1800_v11 = vshrl.u32 %v250_v57, 16  ;;  %v1801_v12 = vshrl.u32 %v251_v58, 16  ;;  %v260_v13 = vadd.s32 %v2031_v10, %v242_v59  ;;  %v261_v15 = vadd.s32 %v2031_v10, %v243_v60 }
  0x35   :  { %v1802_v16 = vshrl.u32 %v252_v61, 16  ;;  %v1803_v17 = vshrl.u32 %v253_v62, 16  ;;  %v262_v14 = vadd.s32 %v2031_v10, %v244_v63  ;;  %v1804_v18 = vshrl.u32 %v254_v0, 16 }
  0x36   :  { %v1805_v19 = vshrl.u32 %v255_v2, 16  ;;  %v295_v20 = vxor.u32 %v1797_v3, %v247_v50  ;;  %v1806_v21 = vshrl.u32 %v256_v4, 16  ;;  %v1807_v22 = vshrl.u32 %v257_v5, 16 }
  0x37   :  { %v296_v23 = vxor.u32 %v1798_v6, %v248_v53  ;;  %v297_v24 = vxor.u32 %v1799_v7, %v249_v54  ;;  %v1808_v25 = vshrl.u32 %v258_v8, 16  ;;  %v1809_v26 = vshrl.u32 %v259_v9, 16 }
  0x38   :  { %v298_v27 = vxor.u32 %v1800_v11, %v250_v57  ;;  %v299_v28 = vxor.u32 %v1801_v12, %v251_v58  ;;  %v1810_v29 = vshrl.u32 %v260_v13, 16  ;;  %v1811_v30 = vshrl.u32 %v261_v15, 16 }
  0x39   :  { %v300_v31 = vxor.u32 %v1802_v16, %v252_v61  ;;  %v301_v32 = vxor.u32 %v1803_v17, %v253_v62  ;;  %v1812_v33 = vshrl.u32 %v262_v14, 16  ;;  %v302_v34 = vxor.u32 %v1804_v18, %v254_v0 }
  0x3a   :  { %v303_v35 = vxor.u32 %v1805_v19, %v255_v2  ;;  %v311_v36 = vmul.u32 2146121005, %v295_v20  ;;  %v304_v10 = vxor.u32 %v1806_v21, %v256_v4  ;;  %v305_v37 = vxor.u32 %v1807_v22, %v257_v5 }
  0x3b   :  { %v312_v38 = vmul.u32 2146121005, %v296_v23  ;;  %v313_v39 = vmul.u32 2146121005, %v297_v24  ;;  %v306_v40 = vxor.u32 %v1808_v25, %v258_v8  ;;  %v307_v41 = vxor.u32 %v1809_v26, %v259_v9 }
  0x3c   :  { %v314_v42 = vmul.u32 2146121005, %v298_v27  ;;  %v315_v43 = vmul.u32 2146121005, %v299_v28  ;;  %v308_v44 = vxor.u32 %v1810_v29, %v260_v13  ;;  %v309_v45 = vxor.u32 %v1811_v30, %v261_v15 }
  0x3d   :  { %v316_v46 = vmul.u32 2146121005, %v300_v31  ;;  %v317_v47 = vmul.u32 2146121005, %v301_v32  ;;  %v310_v48 = vxor.u32 %v1812_v33, %v262_v14  ;;  %v1813_v51 = vshrl.u32 %v311_v36, 15 }
  0x3e   :  { %v318_v49 = vmul.u32 2146121005, %v302_v34  ;;  %v319_v50 = vmul.u32 2146121005, %v303_v35  ;;  %v1814_v54 = vshrl.u32 %v312_v38, 15  ;;  %v1815_v55 = vshrl.u32 %v313_v39, 15 }
  0x3f   :  { %v320_v52 = vmul.u32 2146121005, %v304_v10  ;;  %v321_v53 = vmul.u32 2146121005, %v305_v37  ;;  %v1816_v58 = vshrl.u32 %v314_v42, 15  ;;  %v1817_v59 = vshrl.u32 %v315_v43, 15 }
  0x40   :  { %v322_v56 = vmul.u32 2146121005, %v306_v40  ;;  %v323_v57 = vmul.u32 2146121005, %v307_v41  ;;  %v1818_v62 = vshrl.u32 %v316_v46, 15  ;;  %v1819_v63 = vshrl.u32 %v317_v47, 15 }
  0x41   :  { %v324_v60 = vmul.u32 2146121005, %v308_v44  ;;  %v325_v61 = vmul.u32 2146121005, %v309_v45  ;;  %v1820_v2 = vshrl.u32 %v318_v49, 15  ;;  %v1821_v3 = vshrl.u32 %v319_v50, 15 }
  0x42   :  { %v326_v0 = vmul.u32 2146121005, %v310_v48  ;;  %v359_v4 = vxor.u32 %v1813_v51, %v311_v36  ;;  %v1822_v5 = vshrl.u32 %v320_v52, 15  ;;  %v1823_v6 = vshrl.u32 %v321_v53, 15 }
  0x43   :  { %v360_v7 = vxor.u32 %v1814_v54, %v312_v38  ;;  %v361_v8 = vxor.u32 %v1815_v55, %v313_v39  ;;  %v1824_v9 = vshrl.u32 %v322_v56, 15  ;;  %v1825_v11 = vshrl.u32 %v323_v57, 15 }
  0x44   :  { %v362_v12 = vxor.u32 %v1816_v58, %v314_v42  ;;  %v363_v13 = vxor.u32 %v1817_v59, %v315_v43  ;;  %v1826_v15 = vshrl.u32 %v324_v60, 15  ;;  %v1827_v16 = vshrl.u32 %v325_v61, 15 }
  0x45   :  { %v364_v17 = vxor.u32 %v1818_v62, %v316_v46  ;;  %v365_v14 = vxor.u32 %v1819_v63, %v317_v47  ;;  %v1828_v18 = vshrl.u32 %v326_v0, 15  ;;  %v366_v19 = vxor.u32 %v1820_v2, %v318_v49 }
  0x46   :  { %v367_v20 = vxor.u32 %v1821_v3, %v319_v50  ;;  %v375_v21 = vmul.u32 2221713035, %v359_v4  ;;  %v368_v22 = vxor.u32 %v1822_v5, %v320_v52  ;;  %v369_v23 = vxor.u32 %v1823_v6, %v321_v53 }
  0x47   :  { %v376_v24 = vmul.u32 2221713035, %v360_v7  ;;  %v377_v25 = vmul.u32 2221713035, %v361_v8  ;;  %v370_v26 = vxor.u32 %v1824_v9, %v322_v56  ;;  %v371_v27 = vxor.u32 %v1825_v11, %v323_v57 }
  0x48   :  { %v378_v28 = vmul.u32 2221713035, %v362_v12  ;;  %v379_v29 = vmul.u32 2221713035, %v363_v13  ;;  %v372_v30 = vxor.u32 %v1826_v15, %v324_v60  ;;  %v373_v31 = vxor.u32 %v1827_v16, %v325_v61 }
  0x49   :  { %v380_v32 = vmul.u32 2221713035, %v364_v17  ;;  %v381_v33 = vmul.u32 2221713035, %v365_v14  ;;  %v374_v34 = vxor.u32 %v1828_v18, %v326_v0  ;;  %v1829_v43 = vshrl.u32 %v375_v21, 16 }
  0x4a   :  { %v382_v35 = vmul.u32 2221713035, %v366_v19  ;;  %v383_v36 = vmul.u32 2221713035, %v367_v20  ;;  %v1830_v44 = vshrl.u32 %v376_v24, 16  ;;  %v1831_v45 = vshrl.u32 %v377_v25, 16 }
  0x4b   :  { %v384_v10 = vmul.u32 2221713035, %v368_v22  ;;  %v385_v37 = vmul.u32 2221713035, %v369_v23  ;;  %v1832_v46 = vshrl.u32 %v378_v28, 16  ;;  %v1833_v47 = vshrl.u32 %v379_v29, 16 }
  0x4c   :  { %v386_v38 = vmul.u32 2221713035, %v370_v26  ;;  %v387_v39 = vmul.u32 2221713035, %v371_v27  ;;  %v1834_v48 = vshrl.u32 %v380_v32, 16  ;;  %v1835_v49 = vshrl.u32 %v381_v33, 16 }
  0x4d   :  { %v388_v40 = vmul.u32 2221713035, %v372_v30  ;;  %v389_v41 = vmul.u32 2221713035, %v373_v31  ;;  %v1836_v50 = vshrl.u32 %v382_v35, 16  ;;  %v1837_v51 = vshrl.u32 %v383_v36, 16 }
  0x4e   :  { %v390_v42 = vmul.u32 2221713035, %v374_v34  ;;  %v1838_v52 = vshrl.u32 %v384_v10, 16  ;;  %v1839_v53 = vshrl.u32 %v385_v37, 16  ;;  %v1840_v54 = vshrl.u32 %v386_v38, 16 }
  0x4f   :  { %v1841_v55 = vshrl.u32 %v387_v39, 16  ;;  %v1842_v56 = vshrl.u32 %v388_v40, 16  ;;  %v1843_v57 = vshrl.u32 %v389_v41, 16  ;;  %v423_v59 = vxor.u32 %v1829_v43, %v375_v21 }
  0x50   :  { %v1844_v58 = vshrl.u32 %v390_v42, 16  ;;  %v424_v60 = vxor.u32 %v1830_v44, %v376_v24  ;;  %v425_v61 = vxor.u32 %v1831_v45, %v377_v25  ;;  %v426_v62 = vxor.u32 %v1832_v46, %v378_v28 }
  0x51   :  { %v427_v63 = vxor.u32 %v1833_v47, %v379_v29  ;;  %v428_v0 = vxor.u32 %v1834_v48, %v380_v32  ;;  %v429_v2 = vxor.u32 %v1835_v49, %v381_v33  ;;  %v430_v3 = vxor.u32 %v1836_v50, %v382_v35 }
  0x52   :  { %v431_v4 = vxor.u32 %v1837_v51, %v383_v36  ;;  %v432_v5 = vxor.u32 %v1838_v52, %v384_v10  ;;  %v433_v6 = vxor.u32 %v1839_v53, %v385_v37  ;;  %v434_v7 = vxor.u32 %v1840_v54, %v386_v38 }
  0x53   :  { %v435_v8 = vxor.u32 %v1841_v55, %v387_v39  ;;  %v436_v9 = vxor.u32 %v1842_v56, %v388_v40  ;;  %v437_v11 = vxor.u32 %v1843_v57, %v389_v41  ;;  %v438_v12 = vxor.u32 %v1844_v58, %v390_v42 }
  0x54   :  { %v1845_v13 = vshrl.u32 %v423_v59, 9  ;;  %v1846_v15 = vshrl.u32 %v424_v60, 9  ;;  %v1847_v16 = vshrl.u32 %v425_v61, 9  ;;  %v1848_v17 = vshrl.u32 %v426_v62, 9 }
  0x55   :  { %v1849_v14 = vshrl.u32 %v427_v63, 9  ;;  %v1850_v18 = vshrl.u32 %v428_v0, 9  ;;  %v1851_v19 = vshrl.u32 %v429_v2, 9  ;;  %v1852_v20 = vshrl.u32 %v430_v3, 9 }
  0x56   :  { %v1853_v21 = vshrl.u32 %v431_v4, 9  ;;  %v1854_v22 = vshrl.u32 %v432_v5, 9  ;;  %v1855_v23 = vshrl.u32 %v433_v6, 9  ;;  %v1856_v24 = vshrl.u32 %v434_v7, 9 }
  0x57   :  { %v1857_v25 = vshrl.u32 %v435_v8, 9  ;;  %v1858_v26 = vshrl.u32 %v436_v9, 9  ;;  %v1859_v27 = vshrl.u32 %v437_v11, 9  ;;  %v1860_v28 = vshrl.u32 %v438_v12, 9 }
  0x58   :  { %v471_v29 = vcvt.s32.f32 %v1845_v13  ;;  %v472_v30 = vcvt.s32.f32 %v1846_v15  ;;  %v473_v31 = vcvt.s32.f32 %v1847_v16  ;;  %v474_v32 = vcvt.s32.f32 %v1848_v17 }
  0x59   :  { %v475_v33 = vcvt.s32.f32 %v1849_v14  ;;  %v476_v34 = vcvt.s32.f32 %v1850_v18  ;;  %v477_v35 = vcvt.s32.f32 %v1851_v19  ;;  %v478_v36 = vcvt.s32.f32 %v1852_v20 }
  0x5a   :  { %v479_v10 = vcvt.s32.f32 %v1853_v21  ;;  %v480_v37 = vcvt.s32.f32 %v1854_v22  ;;  %v481_v38 = vcvt.s32.f32 %v1855_v23  ;;  %v482_v39 = vcvt.s32.f32 %v1856_v24 }
  0x5b   :  { %v483_v40 = vcvt.s32.f32 %v1857_v25  ;;  %v484_v41 = vcvt.s32.f32 %v1858_v26  ;;  %v485_v42 = vcvt.s32.f32 %v1859_v27  ;;  %v486_v43 = vcvt.s32.f32 %v1860_v28 }
  0x5c   :  { %v487_v44 = vadd.f32 0.5, %v471_v29  ;;  %v488_v45 = vadd.f32 0.5, %v472_v30  ;;  %v489_v46 = vadd.f32 0.5, %v473_v31  ;;  %v490_v47 = vadd.f32 0.5, %v474_v32 }
  0x5d   :  { %v491_v48 = vadd.f32 0.5, %v475_v33  ;;  %v492_v49 = vadd.f32 0.5, %v476_v34  ;;  %v493_v50 = vadd.f32 0.5, %v477_v35  ;;  %v494_v51 = vadd.f32 0.5, %v478_v36 }
  0x5e   :  { %v495_v52 = vadd.f32 0.5, %v479_v10  ;;  %v496_v53 = vadd.f32 0.5, %v480_v37  ;;  %v497_v54 = vadd.f32 0.5, %v481_v38  ;;  %v498_v55 = vadd.f32 0.5, %v482_v39 }
  0x5f   :  { %v499_v56 = vadd.f32 0.5, %v483_v40  ;;  %v500_v57 = vadd.f32 0.5, %v484_v41  ;;  %v501_v58 = vadd.f32 0.5, %v485_v42  ;;  %v502_v59 = vadd.f32 0.5, %v486_v43 }
  0x60   :  { %v2049_v60 = vmul.f32 1.1920929e-07, %v487_v44  ;;  %v2051_v61 = vmul.f32 1.1920929e-07, %v488_v45  ;;  %v2053_v62 = vmul.f32 1.1920929e-07, %v489_v46  ;;  %v2055_v63 = vmul.f32 1.1920929e-07, %v490_v47 }
  0x61   :  { %v2057_v0 = vmul.f32 1.1920929e-07, %v491_v48  ;;  %v2059_v2 = vmul.f32 1.1920929e-07, %v492_v49  ;;  %v2061_v3 = vmul.f32 1.1920929e-07, %v493_v50  ;;  %v2063_v4 = vmul.f32 1.1920929e-07, %v494_v51 }
  0x62   :  { %v2065_v5 = vmul.f32 1.1920929e-07, %v495_v52  ;;  %v2067_v6 = vmul.f32 1.1920929e-07, %v496_v53  ;;  %v2069_v7 = vmul.f32 1.1920929e-07, %v497_v54  ;;  %v2071_v8 = vmul.f32 1.1920929e-07, %v498_v55 }
  0x63   :  { %3283 = vst [vmem:[#allocation5_spill] sm:$0xff] %v2063_v4  ;;  %v2073_v9 = vmul.f32 1.1920929e-07, %v499_v56  ;;  %v2075_v11 = vmul.f32 1.1920929e-07, %v500_v57  ;;  %v2077_v12 = vmul.f32 1.1920929e-07, %v501_v58  ;;  %v2079_v13 = vmul.f32 1.1920929e-07, %v502_v59 }
  0x64   :  { %3284 = vst [vmem:[#allocation6_spill] sm:$0xff] %v2065_v5  ;;  %3285 = vst [vmem:[#allocation7_spill] sm:$0xff] %v2067_v6  ;;  %v2082_v15 = vadd.f32 -0.5, %v2049_v60  ;;  %v2085_v16 = vadd.f32 -0.5, %v2051_v61  ;;  %v2088_v17 = vadd.f32 -0.5, %v2053_v62  ;;  %v2091_v14 = vadd.f32 -0.5, %v2055_v63 }
  0x65   :  { %3286 = vst [vmem:[#allocation8_spill] sm:$0xff] %v2069_v7  ;;  %3287 = vst [vmem:[#allocation9_spill] sm:$0xff] %v2071_v8  ;;  %v2094_v18 = vadd.f32 -0.5, %v2057_v0  ;;  %v2097_v19 = vadd.f32 -0.5, %v2059_v2  ;;  %v2100_v20 = vadd.f32 -0.5, %v2061_v3  ;;  %v2103_v21 = vadd.f32 -0.5, %v2063_v4 }
  0x66   :  { %3288 = vst [vmem:[#allocation10_spill] sm:$0xff] %v2073_v9  ;;  %3289 = vst [vmem:[#allocation11_spill] sm:$0xff] %v2075_v11  ;;  %v2106_v22 = vadd.f32 -0.5, %v2065_v5  ;;  %v2109_v23 = vadd.f32 -0.5, %v2067_v6  ;;  %v2112_v24 = vadd.f32 -0.5, %v2069_v7  ;;  %v2115_v25 = vadd.f32 -0.5, %v2071_v8 }
  0x67   :  { %3290 = vst [vmem:[#allocation12_spill] sm:$0xff] %v2077_v12  ;;  %3291 = vst [vmem:[#allocation13_spill] sm:$0xff] %v2079_v13  ;;  %v2118_v26 = vadd.f32 -0.5, %v2073_v9  ;;  %v2121_v27 = vadd.f32 -0.5, %v2075_v11  ;;  %v2124_v28 = vadd.f32 -0.5, %v2077_v12  ;;  %v2127_v29 = vadd.f32 -0.5, %v2079_v13 }
  0x68   :  { %3292 = vst [vmem:[#allocation14_spill] sm:$0xff] %v2088_v17  ;;  %3293 = vst [vmem:[#allocation15_spill] sm:$0xff] %v2091_v14  ;;  %v2131_v30 = vmul.f32 %v2082_v15, %v2082_v15  ;;  %v2135_v31 = vmul.f32 %v2085_v16, %v2085_v16  ;;  %v2139_v32 = vmul.f32 %v2088_v17, %v2088_v17 }
  0x69   :  { %3294 = vst [vmem:[#allocation16_spill] sm:$0xff] %v2094_v18  ;;  %3295 = vst [vmem:[#allocation17_spill] sm:$0xff] %v2097_v19  ;;  %v2143_v33 = vmul.f32 %v2091_v14, %v2091_v14  ;;  %v2147_v34 = vmul.f32 %v2094_v18, %v2094_v18  ;;  %v2151_v35 = vmul.f32 %v2097_v19, %v2097_v19 }
  0x6a   :  { %3296 = vst [vmem:[#allocation18_spill] sm:$0xff] %v2100_v20  ;;  %3297 = vst [vmem:[#allocation19_spill] sm:$0xff] %v2103_v21  ;;  %v2155_v36 = vmul.f32 %v2100_v20, %v2100_v20  ;;  %v2159_v10 = vmul.f32 %v2103_v21, %v2103_v21  ;;  %v2163_v37 = vmul.f32 %v2106_v22, %v2106_v22  ;;  %v551_v42 = vmul.f32 -39.69683, %v2131_v30 }
  0x6b   :  { %3298 = vst [vmem:[#allocation20_spill] sm:$0xff] %v2106_v22  ;;  %3299 = vst [vmem:[#allocation21_spill] sm:$0xff] %v2109_v23  ;;  %v2167_v38 = vmul.f32 %v2109_v23, %v2109_v23  ;;  %v2171_v39 = vmul.f32 %v2112_v24, %v2112_v24  ;;  %v2175_v40 = vmul.f32 %v2115_v25, %v2115_v25  ;;  %v552_v43 = vmul.f32 -39.69683, %v2135_v31 }
  0x6c   :  { %3300 = vst [vmem:[#allocation22_spill] sm:$0xff] %v2112_v24  ;;  %3301 = vst [vmem:[#allocation23_spill] sm:$0xff] %v2115_v25  ;;  %v2179_v41 = vmul.f32 %v2118_v26, %v2118_v26  ;;  %v2185_v44 = vmul.f32 %v2121_v27, %v2121_v27  ;;  %v553_v45 = vmul.f32 -39.69683, %v2139_v32  ;;  %v554_v46 = vmul.f32 -39.69683, %v2143_v33 }
  0x6d   :  { %3302 = vst [vmem:[#allocation24_spill] sm:$0xff] %v2118_v26  ;;  %3303 = vst [vmem:[#allocation25_spill] sm:$0xff] %v2121_v27  ;;  %v555_v47 = vmul.f32 -39.69683, %v2147_v34  ;;  %v2192_v48 = vmul.f32 %v2124_v28, %v2124_v28  ;;  %v556_v49 = vmul.f32 -39.69683, %v2151_v35  ;;  %v2199_v52 = vmul.f32 %v2127_v29, %v2127_v29 }
  0x6e   :  { %3304 = vst [vmem:[#allocation26_spill] sm:$0xff] %v2124_v28  ;;  %3305 = vst [vmem:[#allocation27_spill] sm:$0xff] %v2127_v29  ;;  %v557_v50 = vmul.f32 -39.69683, %v2155_v36  ;;  %v558_v51 = vmul.f32 -39.69683, %v2159_v10 }
  0x6f   :  { %v559_v53 = vmul.f32 -39.69683, %v2163_v37  ;;  %v560_v54 = vmul.f32 -39.69683, %v2167_v38  ;;  %v561_v55 = vmul.f32 -39.69683, %v2171_v39 }
  0x70   :  { %v562_v56 = vmul.f32 -39.69683, %v2175_v40  ;;  %v563_v57 = vmul.f32 -39.69683, %v2179_v41  ;;  %v564_v58 = vmul.f32 -39.69683, %v2185_v44 }
  0x71   :  { %v565_v59 = vmul.f32 -39.69683, %v2192_v48  ;;  %v566_v1 = vmul.f32 -39.69683, %v2199_v52  ;;  %v567_v28 = vadd.f32 220.9461, %v551_v42 }
  0x72   :  { %v568_v27 = vadd.f32 220.9461, %v552_v43  ;;  %v569_v29 = vadd.f32 220.9461, %v553_v45  ;;  %v570_v26 = vadd.f32 220.9461, %v554_v46 }
  0x73   :  { %v571_v25 = vadd.f32 220.9461, %v555_v47  ;;  %v572_v24 = vadd.f32 220.9461, %v556_v49  ;;  %v573_v23 = vadd.f32 220.9461, %v557_v50  ;;  %v583_v13 = vmul.f32 %v567_v28, %v2131_v30 }
  0x74   :  { %v574_v22 = vadd.f32 220.9461, %v558_v51  ;;  %v575_v21 = vadd.f32 220.9461, %v559_v53  ;;  %v576_v20 = vadd.f32 220.9461, %v560_v54  ;;  %v584_v11 = vmul.f32 %v568_v27, %v2135_v31 }
  0x75   :  { %v577_v19 = vadd.f32 220.9461, %v561_v55  ;;  %v578_v18 = vadd.f32 220.9461, %v562_v56  ;;  %v579_v14 = vadd.f32 220.9461, %v563_v57  ;;  %v585_v9 = vmul.f32 %v569_v29, %v2139_v32 }
  0x76   :  { %v580_v12 = vadd.f32 220.9461, %v564_v58  ;;  %v586_v42 = vmul.f32 %v570_v26, %v2143_v33  ;;  %v581_v43 = vadd.f32 220.9461, %v565_v59  ;;  %v587_v45 = vmul.f32 %v571_v25, %v2147_v34 }
  0x77   :  { %v588_v46 = vmul.f32 %v572_v24, %v2151_v35  ;;  %v589_v47 = vmul.f32 %v573_v23, %v2155_v36  ;;  %v582_v49 = vadd.f32 220.9461, %v566_v1  ;;  %v590_v50 = vmul.f32 %v574_v22, %v2159_v10 }
  0x78   :  { %v591_v51 = vmul.f32 %v575_v21, %v2163_v37  ;;  %v592_v28 = vmul.f32 %v576_v20, %v2167_v38  ;;  %v593_v27 = vmul.f32 %v577_v19, %v2171_v39  ;;  %v594_v29 = vmul.f32 %v578_v18, %v2175_v40 }
  0x79   :  { %v595_v26 = vmul.f32 %v579_v14, %v2179_v41  ;;  %v599_v53 = vadd.f32 -275.9285, %v583_v13  ;;  %v596_v25 = vmul.f32 %v580_v12, %v2185_v44  ;;  %v600_v54 = vadd.f32 -275.9285, %v584_v11 }
  0x7a   :  { %v601_v24 = vadd.f32 -275.9285, %v585_v9  ;;  %v602_v55 = vadd.f32 -275.9285, %v586_v42  ;;  %v597_v1 = vmul.f32 %v581_v43, %v2192_v48  ;;  %v603_v23 = vadd.f32 -275.9285, %v587_v45 }
  0x7b   :  { %v604_v22 = vadd.f32 -275.9285, %v588_v46  ;;  %v605_v56 = vadd.f32 -275.9285, %v589_v47  ;;  %v598_v21 = vmul.f32 %v582_v49, %v2199_v52  ;;  %v606_v20 = vadd.f32 -275.9285, %v590_v50 }
  0x7c   :  { %v607_v57 = vadd.f32 -275.9285, %v591_v51  ;;  %v608_v19 = vadd.f32 -275.9285, %v592_v28  ;;  %v609_v58 = vadd.f32 -275.9285, %v593_v27  ;;  %v615_v13 = vmul.f32 %v599_v53, %v2131_v30 }
  0x7d   :  { %v610_v18 = vadd.f32 -275.9285, %v594_v29  ;;  %v611_v59 = vadd.f32 -275.9285, %v595_v26  ;;  %v612_v14 = vadd.f32 -275.9285, %v596_v25  ;;  %v616_v11 = vmul.f32 %v600_v54, %v2135_v31 }
  0x7e   :  { %v617_v9 = vmul.f32 %v601_v24, %v2139_v32  ;;  %v613_v12 = vadd.f32 -275.9285, %v597_v1  ;;  %v618_v42 = vmul.f32 %v602_v55, %v2143_v33  ;;  %v619_v43 = vmul.f32 %v603_v23, %v2147_v34 }
  0x7f   :  { %v620_v45 = vmul.f32 %v604_v22, %v2151_v35  ;;  %v614_v46 = vadd.f32 -275.9285, %v598_v21  ;;  %v621_v47 = vmul.f32 %v605_v56, %v2155_v36  ;;  %v622_v49 = vmul.f32 %v606_v20, %v2159_v10 }
  0x80   :  { %v623_v50 = vmul.f32 %v607_v57, %v2163_v37  ;;  %v624_v51 = vmul.f32 %v608_v19, %v2167_v38  ;;  %v625_v28 = vmul.f32 %v609_v58, %v2171_v39  ;;  %v626_v27 = vmul.f32 %v610_v18, %v2175_v40 }
  0x81   :  { %v627_v29 = vmul.f32 %v611_v59, %v2179_v41  ;;  %v628_v26 = vmul.f32 %v612_v14, %v2185_v44  ;;  %v631_v53 = vadd.f32 138.35776, %v615_v13  ;;  %v632_v25 = vadd.f32 138.35776, %v616_v11 }
  0x82   :  { %v633_v54 = vadd.f32 138.35776, %v617_v9  ;;  %v629_v24 = vmul.f32 %v613_v12, %v2192_v48  ;;  %v634_v55 = vadd.f32 138.35776, %v618_v42  ;;  %v635_v1 = vadd.f32 138.35776, %v619_v43 }
  0x83   :  { %v636_v23 = vadd.f32 138.35776, %v620_v45  ;;  %v630_v22 = vmul.f32 %v614_v46, %v2199_v52  ;;  %v637_v56 = vadd.f32 138.35776, %v621_v47  ;;  %v638_v21 = vadd.f32 138.35776, %v622_v49 }
  0x84   :  { %v639_v20 = vadd.f32 138.35776, %v623_v50  ;;  %v640_v57 = vadd.f32 138.35776, %v624_v51  ;;  %v641_v19 = vadd.f32 138.35776, %v625_v28  ;;  %v647_v14 = vmul.f32 %v631_v53, %v2131_v30 }
  0x85   :  { %v642_v58 = vadd.f32 138.35776, %v626_v27  ;;  %v643_v18 = vadd.f32 138.35776, %v627_v29  ;;  %v644_v59 = vadd.f32 138.35776, %v628_v26  ;;  %v648_v13 = vmul.f32 %v632_v25, %v2135_v31 }
  0x86   :  { %v645_v11 = vadd.f32 138.35776, %v629_v24  ;;  %v649_v9 = vmul.f32 %v633_v54, %v2139_v32  ;;  %v650_v12 = vmul.f32 %v634_v55, %v2143_v33  ;;  %v651_v42 = vmul.f32 %v635_v1, %v2147_v34 }
  0x87   :  { %v646_v43 = vadd.f32 138.35776, %v630_v22  ;;  %v652_v45 = vmul.f32 %v636_v23, %v2151_v35  ;;  %v653_v46 = vmul.f32 %v637_v56, %v2155_v36  ;;  %v654_v47 = vmul.f32 %v638_v21, %v2159_v10 }
  0x88   :  { %v655_v49 = vmul.f32 %v639_v20, %v2163_v37  ;;  %v656_v50 = vmul.f32 %v640_v57, %v2167_v38  ;;  %v657_v51 = vmul.f32 %v641_v19, %v2171_v39  ;;  %v658_v28 = vmul.f32 %v642_v58, %v2175_v40 }
  0x89   :  { %v659_v27 = vmul.f32 %v643_v18, %v2179_v41  ;;  %v660_v29 = vmul.f32 %v644_v59, %v2185_v44  ;;  %v663_v26 = vadd.f32 -30.664799, %v647_v14  ;;  %v664_v53 = vadd.f32 -30.664799, %v648_v13 }
  0x8a   :  { %v661_v25 = vmul.f32 %v645_v11, %v2192_v48  ;;  %v665_v54 = vadd.f32 -30.664799, %v649_v9  ;;  %v666_v24 = vadd.f32 -30.664799, %v650_v12  ;;  %v667_v55 = vadd.f32 -30.664799, %v651_v42 }
  0x8b   :  { %v662_v1 = vmul.f32 %v646_v43, %v2199_v52  ;;  %v668_v23 = vadd.f32 -30.664799, %v652_v45  ;;  %v669_v22 = vadd.f32 -30.664799, %v653_v46  ;;  %v670_v56 = vadd.f32 -30.664799, %v654_v47 }
  0x8c   :  { %v671_v21 = vadd.f32 -30.664799, %v655_v49  ;;  %v672_v20 = vadd.f32 -30.664799, %v656_v50  ;;  %v711_v57 = vmul.f32 -54.476097, %v2131_v30  ;;  %v679_v18 = vmul.f32 %v663_v26, %v2131_v30 }
  0x8d   :  { %v673_v19 = vadd.f32 -30.664799, %v657_v51  ;;  %v674_v58 = vadd.f32 -30.664799, %v658_v28  ;;  %v712_v59 = vmul.f32 -54.476097, %v2135_v31  ;;  %v680_v11 = vmul.f32 %v664_v53, %v2135_v31 }
  0x8e   :  { %v675_v14 = vadd.f32 -30.664799, %v659_v27  ;;  %v676_v13 = vadd.f32 -30.664799, %v660_v29  ;;  %v713_v9 = vmul.f32 -54.476097, %v2139_v32  ;;  %v681_v43 = vmul.f32 %v665_v54, %v2139_v32 }
  0x8f   :  { %v677_v12 = vadd.f32 -30.664799, %v661_v25  ;;  %v678_v42 = vadd.f32 -30.664799, %v662_v1  ;;  %v714_v45 = vmul.f32 -54.476097, %v2143_v33  ;;  %v682_v46 = vmul.f32 %v666_v24, %v2143_v33 }
  0x90   :  { %v683_v47 = vmul.f32 %v667_v55, %v2147_v34  ;;  %v715_v49 = vmul.f32 -54.476097, %v2147_v34  ;;  %v727_v50 = vadd.f32 161.58583, %v711_v57  ;;  %v684_v51 = vmul.f32 %v668_v23, %v2151_v35 }
  0x91   :  { %v685_v28 = vmul.f32 %v669_v22, %v2155_v36  ;;  %v716_v27 = vmul.f32 -54.476097, %v2151_v35  ;;  %v728_v29 = vadd.f32 161.58583, %v712_v59  ;;  %v2271_v26 = vmul.f32 %v670_v56, %v2159_v10 }
  0x92   :  { %v2274_v53 = vmul.f32 %v671_v21, %v2163_v37  ;;  %v717_v25 = vmul.f32 -54.476097, %v2155_v36  ;;  %v729_v54 = vadd.f32 161.58583, %v713_v9  ;;  %v2278_v24 = vmul.f32 %v672_v20, %v2167_v38 }
  0x93   :  { %v2281_v55 = vmul.f32 %v673_v19, %v2171_v39  ;;  %v718_v1 = vmul.f32 -54.476097, %v2159_v10  ;;  %v730_v23 = vadd.f32 161.58583, %v714_v45  ;;  %v2285_v22 = vmul.f32 %v674_v58, %v2175_v40 }
  0x94   :  { %v719_v56 = vmul.f32 -54.476097, %v2163_v37  ;;  %v731_v57 = vadd.f32 161.58583, %v715_v49  ;;  %v743_v21 = vmul.f32 %v727_v50, %v2131_v30  ;;  %v2290_v59 = vmul.f32 %v675_v14, %v2179_v41 }
  0x95   :  { %v720_v20 = vmul.f32 -54.476097, %v2167_v38  ;;  %v732_v9 = vadd.f32 161.58583, %v716_v27  ;;  %v744_v19 = vmul.f32 %v728_v29, %v2135_v31  ;;  %v2295_v17 = vmul.f32 %v676_v13, %v2185_v44 }
  0x96   :  { %3306 = vst [vmem:[#allocation28_spill] sm:$0xff] %v2290_v59  ;;  %v2298_v45 = vmul.f32 %v677_v12, %v2192_v48  ;;  %v733_v58 = vadd.f32 161.58583, %v717_v25  ;;  %v745_v8 = vmul.f32 %v729_v54, %v2139_v32  ;;  %v2302_v49 = vmul.f32 %v678_v42, %v2199_v52 }
  0x97   :  { %3307 = vst [vmem:[#allocation29_spill] sm:$0xff] %v2295_v17  ;;  %v695_v50 = vadd.f32 2.5066283, %v679_v18  ;;  %v734_v14 = vadd.f32 161.58583, %v718_v1  ;;  %v746_v59 = vmul.f32 %v730_v23, %v2143_v33  ;;  %v747_v29 = vmul.f32 %v731_v57, %v2147_v34 }
  0x98   :  { %3308 = vst [vmem:[#allocation30_spill] sm:$0xff] %v2298_v45  ;;  %3309 = vst [vmem:[#allocation31_spill] sm:$0xff] %v2302_v49  ;;  %v721_v27 = vmul.f32 -54.476097, %v2171_v39  ;;  %v735_v7 = vadd.f32 161.58583, %v719_v56  ;;  %v748_v25 = vmul.f32 %v732_v9, %v2151_v35  ;;  %v749_v18 = vmul.f32 %v733_v58, %v2155_v36 }
  0x99   :  { %v759_v13 = vadd.f32 -155.69897, %v743_v21  ;;  %v2307_v17 = vadd.f32 2.5066283, %v680_v11  ;;  %v736_v12 = vadd.f32 161.58583, %v720_v20  ;;  %v750_v57 = vmul.f32 %v734_v14, %v2159_v10 }
  0x9a   :  { %v760_v45 = vadd.f32 -155.69897, %v744_v19  ;;  %v2310_v54 = vadd.f32 2.5066283, %v681_v43  ;;  %v2312_v42 = vadd.f32 2.5066283, %v682_v46  ;;  %v751_v20 = vmul.f32 %v735_v7, %v2163_v37 }
  0x9b   :  { %v761_v1 = vadd.f32 -155.69897, %v745_v8  ;;  %v2315_v23 = vadd.f32 2.5066283, %v683_v47  ;;  %v722_v56 = vmul.f32 -54.476097, %v2175_v40  ;;  %v775_v9 = vmul.f32 %v759_v13, %v2131_v30 }
  0x9c   :  { %3310 = vst [vmem:[#allocation32_spill] sm:$0xff] %v2310_v54  ;;  %3311 = vst [vmem:[#allocation33_spill] sm:$0xff] %v2312_v42  ;;  %v762_v21 = vadd.f32 -155.69897, %v746_v59  ;;  %v737_v11 = vadd.f32 161.58583, %v721_v27  ;;  %v752_v46 = vmul.f32 %v736_v12, %v2167_v38  ;;  %v776_v8 = vmul.f32 %v760_v45, %v2135_v31 }
  0x9d   :  { %3312 = vst [vmem:[#allocation34_spill] sm:$0xff] %v2315_v23  ;;  %v763_v49 = vadd.f32 -155.69897, %v747_v29  ;;  %v723_v43 = vmul.f32 -54.476097, %v2179_v41  ;;  %v777_v59 = vmul.f32 %v761_v1, %v2139_v32 }
  0x9e   :  { %v764_v19 = vadd.f32 -155.69897, %v748_v25  ;;  %v2324_v47 = vadd.f32 2.5066283, %v684_v51  ;;  %v2326_v58 = vadd.f32 2.5066283, %v685_v28  ;;  %v778_v29 = vmul.f32 %v762_v21, %v2143_v33 }
  0x9f   :  { %v765_v23 = vadd.f32 -155.69897, %v749_v18  ;;  %v724_v14 = vmul.f32 -54.476097, %v2185_v44  ;;  %v738_v7 = vadd.f32 161.58583, %v722_v56  ;;  %v753_v13 = vmul.f32 %v737_v11, %v2171_v39 }
  0xa0   :  { %3313 = vst [vmem:[#allocation35_spill] sm:$0xff] %v2324_v47  ;;  %3314 = vst [vmem:[#allocation36_spill] sm:$0xff] %v2326_v58  ;;  %v766_v27 = vadd.f32 -155.69897, %v750_v57  ;;  %v767_v42 = vadd.f32 -155.69897, %v751_v20  ;;  %v779_v12 = vmul.f32 %v763_v49, %v2147_v34  ;;  %v780_v28 = vmul.f32 %v764_v19, %v2151_v35 }
  0xa1   :  { %v791_v25 = vadd.f32 66.801315, %v775_v9  ;;  %v739_v45 = vadd.f32 161.58583, %v723_v43  ;;  %v768_v51 = vadd.f32 -155.69897, %v752_v46  ;;  %v781_v1 = vmul.f32 %v765_v23, %v2155_v36 }
  0xa2   :  { %v792_v58 = vadd.f32 66.801315, %v776_v8  ;;  %v725_v18 = vmul.f32 -54.476097, %v2192_v48  ;;  %v793_v47 = vadd.f32 66.801315, %v777_v59  ;;  %v2337_v56 = vmul.f32 %v2082_v15, %v695_v50 }
  0xa3   :  { %v740_v57 = vadd.f32 161.58583, %v724_v14  ;;  %v754_v21 = vmul.f32 %v738_v7, %v2175_v40  ;;  %v782_v11 = vmul.f32 %v766_v27, %v2159_v10  ;;  %v794_v49 = vadd.f32 66.801315, %v778_v29 }
  0xa4   :  { %3315 = vst [vmem:[#allocation37_spill] sm:$0xff] %v2337_v56  ;;  %v769_v20 = vadd.f32 -155.69897, %v753_v13  ;;  %v783_v9 = vmul.f32 %v767_v42, %v2163_v37  ;;  %v795_v43 = vadd.f32 66.801315, %v779_v12  ;;  %v807_v46 = vmul.f32 %v791_v25, %v2131_v30 }
  0xa5   :  { %v755_v19 = vmul.f32 %v739_v45, %v2179_v41  ;;  %v784_v23 = vmul.f32 %v768_v51, %v2167_v38  ;;  %v796_v8 = vadd.f32 66.801315, %v780_v28  ;;  %v808_v15 = vmul.f32 %v792_v58, %v2135_v31 }
  0xa6   :  { %v726_v50 = vmul.f32 -54.476097, %v2199_v52  ;;  %v741_v59 = vadd.f32 161.58583, %v725_v18  ;;  %v797_v14 = vadd.f32 66.801315, %v781_v1  ;;  %v809_v7 = vmul.f32 %v793_v47, %v2139_v32 }
  0xa7   :  { %v756_v27 = vmul.f32 %v740_v57, %v2185_v44  ;;  %v770_v29 = vadd.f32 -155.69897, %v754_v21  ;;  %v798_v42 = vadd.f32 66.801315, %v782_v11  ;;  %v810_v13 = vmul.f32 %v794_v49, %v2143_v33 }
  0xa8   :  { %v785_v12 = vmul.f32 %v769_v20, %v2171_v39  ;;  %v799_v25 = vadd.f32 66.801315, %v783_v9  ;;  %v811_v45 = vmul.f32 %v795_v43, %v2147_v34  ;;  %v823_v51 = vadd.f32 -13.280682, %v807_v46 }
  0xa9   :  { %v771_v28 = vadd.f32 -155.69897, %v755_v19  ;;  %v800_v58 = vadd.f32 66.801315, %v784_v23  ;;  %v812_v56 = vmul.f32 %v796_v8, %v2151_v35  ;;  %v824_v18 = vadd.f32 -13.280682, %v808_v15 }
  0xaa   :  { %v742_v1 = vadd.f32 161.58583, %v726_v50  ;;  %v757_v47 = vmul.f32 %v741_v59, %v2192_v48  ;;  %v813_v57 = vmul.f32 %v797_v14, %v2155_v36  ;;  %v825_v21 = vadd.f32 -13.280682, %v809_v7 }
  0xab   :  { %v772_v11 = vadd.f32 -155.69897, %v756_v27  ;;  %v786_v49 = vmul.f32 %v770_v29, %v2175_v40  ;;  %v814_v20 = vmul.f32 %v798_v42, %v2159_v10  ;;  %v826_v9 = vadd.f32 -13.280682, %v810_v13 }
  0xac   :  { %v801_v54 = vadd.f32 66.801315, %v785_v12  ;;  %v815_v43 = vmul.f32 %v799_v25, %v2163_v37  ;;  %v827_v46 = vadd.f32 -13.280682, %v811_v45  ;;  %v839_v19 = vmul.f32 %v823_v51, %v2131_v30 }
  0xad   :  { %v787_v23 = vmul.f32 %v771_v28, %v2179_v41  ;;  %v816_v8 = vmul.f32 %v800_v58, %v2167_v38  ;;  %v828_v15 = vadd.f32 -13.280682, %v812_v56  ;;  %v840_v50 = vmul.f32 %v824_v18, %v2135_v31 }
  0xae   :  { %v758_v59 = vmul.f32 %v742_v1, %v2199_v52  ;;  %v773_v14 = vadd.f32 -155.69897, %v757_v47  ;;  %v829_v7 = vadd.f32 -13.280682, %v813_v57  ;;  %v841_v27 = vmul.f32 %v825_v21, %v2139_v32 }
  0xaf   :  { %v788_v29 = vmul.f32 %v772_v11, %v2185_v44  ;;  %v802_v42 = vadd.f32 66.801315, %v786_v49  ;;  %v830_v13 = vadd.f32 -13.280682, %v814_v20  ;;  %v842_v12 = vmul.f32 %v826_v9, %v2143_v33 }
  0xb0   :  { %v817_v30 = vmul.f32 %v801_v54, %v2171_v39  ;;  %v831_v25 = vadd.f32 -13.280682, %v815_v43  ;;  %v843_v45 = vmul.f32 %v827_v46, %v2147_v34  ;;  %v855_v56 = vadd.f32 1.0, %v839_v19 }
  0xb1   :  { %v803_v51 = vadd.f32 66.801315, %v787_v23  ;;  %v832_v31 = vadd.f32 -13.280682, %v816_v8  ;;  %v844_v28 = vmul.f32 %v828_v15, %v2151_v35  ;;  %v856_v58 = vadd.f32 1.0, %v840_v50 }
  0xb2   :  { %v774_v18 = vadd.f32 -155.69897, %v758_v59  ;;  %v789_v32 = vmul.f32 %v773_v14, %v2192_v48  ;;  %v845_v1 = vmul.f32 %v829_v7, %v2155_v36  ;;  %v857_v47 = vadd.f32 1.0, %v841_v27 }
  0xb3   :  { %v804_v57 = vadd.f32 66.801315, %v788_v29  ;;  %v818_v33 = vmul.f32 %v802_v42, %v2175_v40  ;;  %v846_v54 = vmul.f32 %v830_v13, %v2159_v10  ;;  %v858_v21 = vadd.f32 1.0, %v842_v12 }
  0xb4   :  { %v833_v11 = vadd.f32 -13.280682, %v817_v30  ;;  %v847_v34 = vmul.f32 %v831_v25, %v2163_v37  ;;  %v859_v49 = vadd.f32 1.0, %v843_v45  ;;  %1878 = vrcp.f32 %v855_v56 }
  0xb5   :  { %v819_v35 = vmul.f32 %v803_v51, %v2179_v41  ;;  %v848_v20 = vmul.f32 %v832_v31, %v2167_v38  ;;  %v860_v9 = vadd.f32 1.0, %v844_v28  ;;  %1880 = vrcp.f32 %v856_v58 }
  0xb6   :  { %v805_v43 = vadd.f32 66.801315, %v789_v32  ;;  %v861_v36 = vadd.f32 1.0, %v845_v1  ;;  %1882 = vrcp.f32 %v857_v47  ;;  %v919_v46 = vsub.f32 1.0, %v2049_v60 }
  0xb7   :  { %v834_v19 = vadd.f32 -13.280682, %v818_v33  ;;  %v862_v23 = vadd.f32 1.0, %v846_v54  ;;  %1884 = vrcp.f32 %v858_v21  ;;  %v920_v10 = vsub.f32 1.0, %v2051_v61 }
  0xb8   :  { %v820_v37 = vmul.f32 %v804_v57, %v2185_v44  ;;  %v849_v8 = vmul.f32 %v833_v11, %v2171_v39  ;;  %v863_v15 = vadd.f32 1.0, %v847_v34  ;;  %1886 = vrcp.f32 %v859_v49 }
  0xb9   :  { %v835_v50 = vadd.f32 -13.280682, %v819_v35  ;;  %v864_v38 = vadd.f32 1.0, %v848_v20  ;;  %1888 = vrcp.f32 %v860_v9  ;;  %v921_v59 = vsub.f32 1.0, %v2053_v62 }
  0xba   :  { %v821_v14 = vmul.f32 %v805_v43, %v2192_v48  ;;  %1890 = vrcp.f32 %v861_v36  ;;  %v922_v7 = vsub.f32 1.0, %v2055_v63  ;;  %v2384_v27 = vmin.f32 %v2049_v60, %v919_v46 }
  0xbb   :  { %v2387_v29 = vadd.f32 2.5066283, %v2271_v26  ;;  %v850_v39 = vmul.f32 %v834_v19, %v2175_v40  ;;  %1892 = vrcp.f32 %v862_v23  ;;  %v2391_v42 = vmin.f32 %v2051_v61, %v920_v10  ;;  %v3319_v19 = vld [vmem:[#allocation8_spill] sm:$0xff] }
  0xbc   :  { %v790_v13 = vmul.f32 %v774_v18, %v2199_v52  ;;  %v865_v12 = vadd.f32 1.0, %v849_v8  ;;  %1894 = vrcp.f32 %v863_v15  ;;  %v923_v30 = vsub.f32 1.0, %v2057_v0  ;;  %v3321_v15 = vld [vmem:[#allocation9_spill] sm:$0xff] }
  0xbd   :  { %v836_v25 = vadd.f32 -13.280682, %v820_v37  ;;  %v851_v45 = vmul.f32 %v835_v50, %v2179_v41  ;;  %1896 = vrcp.f32 %v864_v38  ;;  %v2397_v56 = vmin.f32 %v2053_v62, %v921_v59  ;;  %v3320_v37 = vld [vmem:[#allocation28_spill] sm:$0xff] }
  0xbe   :  { %v2399_v26 = vpop.eup %1878  ;;  %v837_v40 = vadd.f32 -13.280682, %v821_v14  ;;  %v924_v51 = vsub.f32 1.0, %v2059_v2  ;;  %v2403_v31 = vmin.f32 %v2055_v63, %v922_v7  ;;  %1898 = vlog2.f32 %v2384_v27  ;;  %v3322_v59 = vld [vmem:[#allocation32_spill] sm:$0xff]  ;;  %v3323_v14 = vld [vmem:[#allocation14_spill] sm:$0xff] }
  0xbf   :  { %v2406_v28 = vpop.eup %1880  ;;  %v2409_v58 = vadd.f32 2.5066283, %v2274_v53  ;;  %v866_v41 = vadd.f32 1.0, %v850_v39  ;;  %v925_v18 = vsub.f32 1.0, %v2061_v3  ;;  %1900 = vlog2.f32 %v2391_v42  ;;  %v3324_v39 = vld [vmem:[#allocation10_spill] sm:$0xff] }
  0xc0   :  { %v2413_v32 = vpop.eup %1882  ;;  %v2416_v1 = vadd.f32 2.5066283, %v2278_v24  ;;  %1902 = vrcp.f32 %v865_v12  ;;  %v926_v47 = vsub.f32 1.0, %v2063_v4  ;;  %v2420_v57 = vmin.f32 %v2057_v0, %v923_v30 }
  0xc1   :  { %v2422_v33 = vpop.eup %1884  ;;  %v806_v53 = vadd.f32 66.801315, %v790_v13  ;;  %v852_v54 = vmul.f32 %v836_v25, %v2185_v44  ;;  %v867_v21 = vadd.f32 1.0, %v851_v45  ;;  %1904 = vlog2.f32 %v2397_v56  ;;  %v3326_v25 = vld [vmem:[#allocation29_spill] sm:$0xff] }
  0xc2   :  { %v2426_v11 = vpop.eup %1886  ;;  %v853_v34 = vmul.f32 %v837_v40, %v2192_v48  ;;  %v2431_v24 = vmul.f32 %v2085_v16, %v2307_v17  ;;  %v2434_v49 = vmin.f32 %v2059_v2, %v924_v51  ;;  %1906 = vlog2.f32 %v2403_v31  ;;  %v3327_v40 = vld [vmem:[#allocation11_spill] sm:$0xff] }
  0xc3   :  { %v2437_v35 = vpop.eup %1888  ;;  %v2440_v44 = vadd.f32 2.5066283, %v2281_v55  ;;  %1908 = vrcp.f32 %v866_v41  ;;  %v927_v20 = vsub.f32 1.0, %v2065_v5  ;;  %v2444_v9 = vmin.f32 %v2061_v3, %v925_v18 }
  0xc4   :  { %3316 = vst [vmem:[#allocation38_spill] sm:$0xff] %v2434_v49  ;;  %v2446_v48 = vpop.eup %1890  ;;  %v2449_v16 = vadd.f32 2.5066283, %v2285_v22  ;;  %v928_v17 = vsub.f32 1.0, %v2067_v6  ;;  %v2453_v43 = vmin.f32 %v2063_v4, %v926_v47  ;;  %1910 = vlog2.f32 %v2420_v57 }
  0xc5   :  { %3317 = vst [vmem:[#allocation39_spill] sm:$0xff] %v2444_v9  ;;  %v2456_v55 = vpop.eup %1892  ;;  %v822_v36 = vmul.f32 %v806_v53, %v2199_v52  ;;  %v868_v46 = vadd.f32 1.0, %v852_v54  ;;  %1912 = vrcp.f32 %v867_v21  ;;  %v929_v23 = vsub.f32 1.0, %v3319_v19  ;;  %v3329_v53 = vld [vmem:[#allocation12_spill] sm:$0xff] }
  0xc6   :  { %3318 = vst [vmem:[#allocation40_spill] sm:$0xff] %v2453_v43  ;;  %v2460_v10 = vpop.eup %1894  ;;  %v2463_v22 = vadd.f32 2.5066283, %v3320_v37  ;;  %v869_v8 = vadd.f32 1.0, %v853_v34  ;;  %v930_v50 = vsub.f32 1.0, %v3321_v15  ;;  %1914 = vlog2.f32 %v2434_v49 }
  0xc7   :  { %v2467_v38 = vpop.eup %1896  ;;  %v2471_v7 = vmul.f32 %v3323_v14, %v3322_v59  ;;  %v931_v13 = vsub.f32 1.0, %v3324_v39  ;;  %v2475_v12 = vmin.f32 %v2065_v5, %v927_v20  ;;  %1916 = vlog2.f32 %v2444_v9  ;;  %v3331_v20 = vld [vmem:[#allocation30_spill] sm:$0xff]  ;;  %v3332_v59 = vld [vmem:[#allocation13_spill] sm:$0xff]  ;;  %v3337_v9 = vld [vmem:[#allocation15_spill] sm:$0xff] }
  0xc8   :  { %v1899_v30 = vpop.eup %1898  ;;  %v708_v45 = vadd.f32 2.5066283, %v3326_v25  ;;  %v932_v51 = vsub.f32 1.0, %v3327_v40  ;;  %v2481_v41 = vmin.f32 %v2067_v6, %v928_v17  ;;  %1918 = vlog2.f32 %v2453_v43  ;;  %v3334_v43 = vld [vmem:[#allocation31_spill] sm:$0xff] }
  0xc9   :  { %3325 = vst [vmem:[#allocation28_spill] sm:$0xff] %v2475_v12  ;;  %v1901_v18 = vpop.eup %1900  ;;  %v838_v47 = vadd.f32 -13.280682, %v822_v36  ;;  %1920 = vrcp.f32 %v868_v46  ;;  %v933_v54 = vsub.f32 1.0, %v3329_v53  ;;  %v2486_v21 = vmin.f32 %v3319_v19, %v929_v23  ;;  %v3336_v19 = vld [vmem:[#allocation33_spill] sm:$0xff] }
  0xca   :  { %3328 = vst [vmem:[#allocation32_spill] sm:$0xff] %v2481_v41  ;;  %v2488_v34 = vpop.eup %1902  ;;  %v709_v37 = vadd.f32 2.5066283, %v3331_v20  ;;  %1922 = vrcp.f32 %v869_v8  ;;  %v934_v14 = vsub.f32 1.0, %v3332_v59  ;;  %v2493_v17 = vmin.f32 %v3321_v15, %v930_v50  ;;  %v3339_v15 = vld [vmem:[#allocation34_spill] sm:$0xff] }
  0xcb   :  { %3330 = vst [vmem:[#allocation14_spill] sm:$0xff] %v2486_v21  ;;  %v1905_v25 = vpop.eup %1904  ;;  %v710_v6 = vadd.f32 2.5066283, %v3334_v43  ;;  %v2497_v36 = vmin.f32 %v3324_v39, %v931_v13  ;;  %v952_v46 = vmul.f32 0.6931472, %v1899_v30  ;;  %1924 = vlog2.f32 %v2475_v12  ;;  %v3340_v13 = vld [vmem:[#allocation16_spill] sm:$0xff] }
  0xcc   :  { %3333 = vst [vmem:[#allocation29_spill] sm:$0xff] %v2493_v17  ;;  %v1907_v23 = vpop.eup %1906  ;;  %v874_v5 = vmul.f32 %v3337_v9, %v3336_v19  ;;  %v2503_v8 = vmin.f32 %v3327_v40, %v932_v51  ;;  %v954_v20 = vmul.f32 0.6931472, %v1901_v18  ;;  %1926 = vlog2.f32 %v2481_v41  ;;  %v3342_v9 = vld [vmem:[#allocation35_spill] sm:$0xff]  ;;  %v3343_v19 = vld [vmem:[#allocation17_spill] sm:$0xff] }
  0xcd   :  { %3335 = vst [vmem:[#allocation30_spill] sm:$0xff] %v2497_v36  ;;  %v2506_v50 = vpop.eup %1908  ;;  %v854_v43 = vmul.f32 %v838_v47, %v2199_v52  ;;  %v875_v39 = vmul.f32 %v3340_v13, %v3339_v15  ;;  %v2512_v30 = vmin.f32 %v3329_v53, %v933_v54  ;;  %1928 = vlog2.f32 %v2486_v21  ;;  %v3345_v52 = vld [vmem:[#allocation36_spill] sm:$0xff]  ;;  %v3346_v47 = vld [vmem:[#allocation18_spill] sm:$0xff]  ;;  %v3347_v53 = vld [vmem:[#allocation19_spill] sm:$0xff] }
  0xce   :  { %3338 = vst [vmem:[#allocation31_spill] sm:$0xff] %v2503_v8  ;;  %v1911_v12 = vpop.eup %1910  ;;  %v876_v51 = vmul.f32 %v3343_v19, %v3342_v9  ;;  %v2518_v18 = vmin.f32 %v3332_v59, %v934_v14  ;;  %v956_v40 = vmul.f32 0.6931472, %v1905_v25  ;;  %1930 = vlog2.f32 %v2493_v17  ;;  %v3348_v9 = vld [vmem:[#allocation20_spill] sm:$0xff] }
  0xcf   :  { %3341 = vst [vmem:[#allocation33_spill] sm:$0xff] %v2512_v30  ;;  %v1913_v41 = vpop.eup %1912  ;;  %v877_v49 = vmul.f32 %v3346_v47, %v3345_v52  ;;  %v958_v15 = vmul.f32 0.6931472, %v1907_v23  ;;  %1932 = vlog2.f32 %v2497_v36  ;;  %v2524_v54 = vmul.f32 -2.0, %v952_v46  ;;  %v3349_v52 = vld [vmem:[#allocation21_spill] sm:$0xff]  ;;  %v3350_v36 = vld [vmem:[#allocation22_spill] sm:$0xff] }
  0xd0   :  { %3344 = vst [vmem:[#allocation15_spill] sm:$0xff] %v2518_v18  ;;  %v1915_v13 = vpop.eup %1914  ;;  %v878_v21 = vmul.f32 %v3347_v53, %v2387_v29  ;;  %v879_v14 = vmul.f32 %v3348_v9, %v2409_v58  ;;  %1934 = vlog2.f32 %v2503_v8  ;;  %v2531_v25 = vmul.f32 -2.0, %v954_v20  ;;  %v3351_v29 = vld [vmem:[#allocation23_spill] sm:$0xff] }
  0xd1   :  { %v1917_v19 = vpop.eup %1916  ;;  %v870_v59 = vadd.f32 1.0, %v854_v43  ;;  %v880_v23 = vmul.f32 %v3349_v52, %v2416_v1  ;;  %v960_v47 = vmul.f32 0.6931472, %v1911_v12  ;;  %1936 = vlog2.f32 %v2512_v30  ;;  %v3352_v43 = vld [vmem:[#allocation24_spill] sm:$0xff]  ;;  %v3355_v30 = vld [vmem:[#allocation27_spill] sm:$0xff] }
  0xd2   :  { %v1919_v46 = vpop.eup %1918  ;;  %v881_v17 = vmul.f32 %v3350_v36, %v2440_v44  ;;  %v882_v53 = vmul.f32 %v3351_v29, %v2449_v16  ;;  %1938 = vlog2.f32 %v2518_v18  ;;  %v2541_v58 = vmul.f32 -2.0, %v956_v40  ;;  %v3353_v44 = vld [vmem:[#allocation25_spill] sm:$0xff]  ;;  %v3354_v16 = vld [vmem:[#allocation26_spill] sm:$0xff] }
  0xd3   :  { %v2543_v20 = vpop.eup %1920  ;;  %v883_v9 = vmul.f32 %v3352_v43, %v2463_v22  ;;  %v962_v1 = vmul.f32 0.6931472, %v1915_v13  ;;  %v2547_v12 = vmul.f32 -2.0, %v958_v15  ;;  %1940 = vrsqrt.f32 %v2524_v54  ;;  %v3356_v43 = vld [vmem:[#allocation37_spill] sm:$0xff] }
  0xd4   :  { %v2550_v52 = vpop.eup %1922  ;;  %v2553_v36 = vmul.f32 %v3353_v44, %v708_v45  ;;  %v2556_v29 = vmul.f32 %v3354_v16, %v709_v37  ;;  %v964_v40 = vmul.f32 0.6931472, %v1917_v19  ;;  %1942 = vrsqrt.f32 %v2531_v25 }
  0xd5   :  { %v1925_v18 = vpop.eup %1924  ;;  %v2560_v8 = vmul.f32 %v3355_v30, %v710_v6  ;;  %1944 = vrcp.f32 %v870_v59  ;;  %v966_v22 = vmul.f32 0.6931472, %v1919_v46  ;;  %v2562_v15 = vmul.f32 -2.0, %v960_v47 }
  0xd6   :  { %v1927_v13 = vpop.eup %1926  ;;  %v2566_v4 = vmul.f32 %v2399_v26, %v3356_v43  ;;  %v2570_v45 = vmul.f32 %v2406_v28, %v2431_v24  ;;  %v2574_v37 = vmul.f32 %v2413_v32, %v2471_v7  ;;  %1946 = vrsqrt.f32 %v2541_v58 }
  0xd7   :  { %v1929_v6 = vpop.eup %1928  ;;  %v2578_v59 = vmul.f32 %v2422_v33, %v874_v5  ;;  %v2581_v30 = vmul.f32 %v2426_v11, %v875_v39  ;;  %v2583_v19 = vmul.f32 -2.0, %v962_v1  ;;  %1948 = vrsqrt.f32 %v2547_v12 }
  0xd8   :  { %3357 = vst [vmem:[#allocation34_spill] sm:$0xff] %v2566_v4  ;;  %3358 = vst [vmem:[#allocation16_spill] sm:$0xff] %v2570_v45  ;;  %v1931_v26 = vpop.eup %1930  ;;  %v2587_v28 = vmul.f32 %v2437_v35, %v876_v51  ;;  %v2590_v32 = vmul.f32 %v2446_v48, %v877_v49  ;;  %v968_v24 = vmul.f32 0.6931472, %v1925_v18  ;;  %v2592_v7 = vmul.f32 -2.0, %v964_v40 }
  0xd9   :  { %3359 = vst [vmem:[#allocation35_spill] sm:$0xff] %v2574_v37  ;;  %3360 = vst [vmem:[#allocation17_spill] sm:$0xff] %v2578_v59  ;;  %v1933_v47 = vpop.eup %1932  ;;  %v2595_v5 = vmul.f32 %v2456_v55, %v878_v21  ;;  %v2598_v33 = vmul.f32 %v2460_v10, %v879_v14  ;;  %v2600_v11 = vmul.f32 -2.0, %v966_v22  ;;  %1950 = vrsqrt.f32 %v2562_v15 }
  0xda   :  { %3361 = vst [vmem:[#allocation36_spill] sm:$0xff] %v2581_v30  ;;  %3362 = vst [vmem:[#allocation18_spill] sm:$0xff] %v2587_v28  ;;  %v1935_v39 = vpop.eup %1934  ;;  %v2604_v35 = vmul.f32 %v2467_v38, %v880_v23  ;;  %v2607_v49 = vmul.f32 %v2488_v34, %v881_v17  ;;  %v2610_v48 = vmul.f32 %v2506_v50, %v882_v53  ;;  %v970_v51 = vmul.f32 0.6931472, %v1927_v13 }
  0xdb   :  { %3363 = vst [vmem:[#allocation19_spill] sm:$0xff] %v2590_v32  ;;  %3364 = vst [vmem:[#allocation20_spill] sm:$0xff] %v2595_v5  ;;  %v1937_v55 = vpop.eup %1936  ;;  %v2612_v21 = vmul.f32 %v1913_v41, %v883_v9  ;;  %v972_v10 = vmul.f32 0.6931472, %v1929_v6  ;;  %vm1001_vm0 = vcmp.eq.f32.partialorder %v2524_v54, inf  ;;  %1952 = vrsqrt.f32 %v2583_v19 }
  0xdc   :  { %3365 = vst [vmem:[#allocation21_spill] sm:$0xff] %v2598_v33  ;;  %3366 = vst [vmem:[#allocation22_spill] sm:$0xff] %v2604_v35  ;;  %v1939_v18 = vpop.eup %1938  ;;  %v974_v14 = vmul.f32 0.6931472, %v1931_v26  ;;  %v2616_v46 = vmul.f32 -2.0, %v968_v24  ;;  %vm1003_vm1 = vcmp.eq.f32.partialorder %v2524_v54, 0.0  ;;  %1954 = vrsqrt.f32 %v2592_v7 }
  0xdd   :  { %3367 = vst [vmem:[#allocation23_spill] sm:$0xff] %v2607_v49  ;;  %3368 = vst [vmem:[#allocation24_spill] sm:$0xff] %v2610_v48  ;;  %v1004_v38 = vand.u32 2147483648, %v2524_v54  ;;  %v1941_v34 = vpop.eup %1940  ;;  %v976_v17 = vmul.f32 0.6931472, %v1933_v47  ;;  %vm1008_vm2 = vcmp.eq.f32.partialorder %v2531_v25, inf  ;;  %1956 = vrsqrt.f32 %v2600_v11 }
  0xde   :  { %3369 = vst [vmem:[#allocation25_spill] sm:$0xff] %v2612_v21  ;;  %vm1010_vm3 = vcmp.eq.f32.partialorder %v2531_v25, 0.0  ;;  %v1943_v41 = vpop.eup %1942  ;;  %v978_v50 = vmul.f32 0.6931472, %v1935_v39  ;;  %v2624_v23 = vmul.f32 -2.0, %v970_v51  ;;  %v1011_v53 = vand.u32 2147483648, %v2531_v25 }
  0xdf   :  { %vm1015_vm4 = vcmp.eq.f32.partialorder %v2541_v58, inf  ;;  %v2628_v9 = vpop.eup %1944  ;;  %v980_v1 = vmul.f32 0.6931472, %v1937_v55  ;;  %v2630_v44 = vmul.f32 -2.0, %v972_v10  ;;  %vm1017_vm5 = vcmp.eq.f32.partialorder %v2541_v58, 0.0 }
  0xe0   :  { %v1018_v16 = vand.u32 2147483648, %v2541_v58  ;;  %vm1022_vm6 = vcmp.eq.f32.partialorder %v2547_v12, inf  ;;  %v1947_v40 = vpop.eup %1946  ;;  %v982_v22 = vmul.f32 0.6931472, %v1939_v18  ;;  %v2635_v13 = vmul.f32 -2.0, %v974_v14 }
  0xe1   :  { %v1000_v43 = vmul.f32 %v1941_v34, %v2524_v54  ;;  %vm1024_vm7 = vcmp.eq.f32.partialorder %v2547_v12, 0.0  ;;  %1958 = vrsqrt.f32 %v2616_v46  ;;  %v1949_v6 = vpop.eup %1948  ;;  %v2640_v26 = vmul.f32 -2.0, %v976_v17 }
  0xe2   :  { %v1007_v24 = vmul.f32 %v1943_v41, %v2531_v25  ;;  %v1025_v47 = vand.u32 2147483648, %v2547_v12  ;;  %vm1029_vm8 = vcmp.eq.f32.partialorder %v2562_v15, inf  ;;  %v2645_v39 = vmul.f32 -2.0, %v978_v50 }
  0xe3   :  { %vm1031_vm9 = vcmp.eq.f32.partialorder %v2562_v15, 0.0  ;;  %v1032_v51 = vand.u32 2147483648, %v2562_v15  ;;  %vm1036_vm10 = vcmp.eq.f32.partialorder %v2583_v19, inf  ;;  %1960 = vrsqrt.f32 %v2624_v23  ;;  %v1951_v55 = vpop.eup %1950 }
  0xe4   :  { %v2651_v10 = vmul.f32 -2.0, %v980_v1  ;;  %v1014_v18 = vmul.f32 %v1947_v40, %v2541_v58  ;;  %v1039_v14 = vand.u32 2147483648, %v2583_v19  ;;  %1962 = vrsqrt.f32 %v2630_v44 }
  0xe5   :  { %v2656_v34 = vmul.f32 -2.0, %v982_v22  ;;  %v1002_v17 = vsel %vm1001_vm0, %v2524_v54, %v1000_v43  ;;  %v1021_v41 = vmul.f32 %v1949_v6, %v2547_v12  ;;  %vm1038_vm11 = vcmp.eq.f32.partialorder %v2583_v19, 0.0  ;;  %v1953_v50 = vpop.eup %1952 }
  0xe6   :  { %1964 = vrsqrt.f32 %v2635_v13  ;;  %v1009_v1 = vsel %vm1008_vm2, %v2531_v25, %v1007_v24  ;;  %vm1043_vm12 = vcmp.eq.f32.partialorder %v2592_v7, inf  ;;  %vm1045_vm13 = vcmp.eq.f32.partialorder %v2592_v7, 0.0  ;;  %v1955_v40 = vpop.eup %1954 }
  0xe7   :  { %1966 = vrsqrt.f32 %v2640_v26  ;;  %v1028_v22 = vmul.f32 %v1951_v55, %v2562_v15  ;;  %v1046_v43 = vand.u32 2147483648, %v2592_v7  ;;  %vm1050_vm14 = vcmp.eq.f32.partialorder %v2600_v11, inf  ;;  %v1957_v6 = vpop.eup %1956 }
  0xe8   :  { %1968 = vrsqrt.f32 %v2645_v39  ;;  %v2676_v21 = vsel %vm1003_vm1, %v1004_v38, %v1002_v17  ;;  %v1016_v24 = vsel %vm1015_vm4, %v2541_v58, %v1014_v18  ;;  %vm1052_vm15 = vcmp.eq.f32.partialorder %v2600_v11, 0.0 }
  0xe9   :  { %1970 = vrsqrt.f32 %v2651_v10  ;;  %v2685_v55 = vsel %vm1010_vm3, %v1011_v53, %v1009_v1  ;;  %v1023_v48 = vsel %vm1022_vm6, %v2547_v12, %v1021_v41  ;;  %v1035_v54 = vmul.f32 %v1953_v50, %v2583_v19 }
  0xea   :  { %1972 = vrsqrt.f32 %v2656_v34  ;;  %v1042_v38 = vmul.f32 %v1955_v40, %v2592_v7  ;;  %v1053_v18 = vand.u32 2147483648, %v2600_v11  ;;  %vm1057_vm0 = vcmp.eq.f32.partialorder %v2616_v46, inf }
  0xeb   :  { %vm1059_vm1 = vcmp.eq.f32.partialorder %v2616_v46, 0.0  ;;  %v1959_v17 = vpop.eup %1958  ;;  %v2698_v25 = vsel %vm1017_vm5, %v1018_v16, %v1016_v24  ;;  %v1030_v53 = vsel %vm1029_vm8, %v2562_v15, %v1028_v22  ;;  %v1049_v41 = vmul.f32 %v1957_v6, %v2600_v11 }
  0xec   :  { %v1060_v50 = vand.u32 2147483648, %v2616_v46  ;;  %v2707_v1 = vsel %vm1024_vm7, %v1025_v47, %v1023_v48  ;;  %vm1064_vm2 = vcmp.eq.f32.partialorder %v2624_v23, inf  ;;  %vm1066_vm3 = vcmp.eq.f32.partialorder %v2624_v23, 0.0 }
  0xed   :  { %v1067_v58 = vand.u32 2147483648, %v2624_v23  ;;  %v1961_v16 = vpop.eup %1960  ;;  %v1037_v40 = vsel %vm1036_vm10, %v2583_v19, %v1035_v54  ;;  %vm1071_vm4 = vcmp.eq.f32.partialorder %v2630_v44, inf  ;;  %vm1073_vm5 = vcmp.eq.f32.partialorder %v2630_v44, 0.0 }
  0xee   :  { %v1074_v22 = vand.u32 2147483648, %v2630_v44  ;;  %v1963_v12 = vpop.eup %1962  ;;  %v2720_v48 = vsel %vm1031_vm9, %v1032_v51, %v1030_v53  ;;  %v1044_v47 = vsel %vm1043_vm12, %v2592_v7, %v1042_v38  ;;  %v1056_v6 = vmul.f32 %v1959_v17, %v2616_v46 }
  0xef   :  { %vm1078_vm6 = vcmp.eq.f32.partialorder %v2635_v13, inf  ;;  %v1051_v54 = vsel %vm1050_vm14, %v2600_v11, %v1049_v41  ;;  %vm1080_vm7 = vcmp.eq.f32.partialorder %v2635_v13, 0.0  ;;  %v1081_v49 = vand.u32 2147483648, %v2635_v13 }
  0xf0   :  { %v1965_v24 = vpop.eup %1964  ;;  %vm1085_vm8 = vcmp.eq.f32.partialorder %v2640_v26, inf  ;;  %v2735_v51 = vsel %vm1038_vm11, %v1039_v14, %v1037_v40  ;;  %v1063_v38 = vmul.f32 %v1961_v16, %v2624_v23  ;;  %vm1087_vm9 = vcmp.eq.f32.partialorder %v2640_v26, 0.0 }
  0xf1   :  { %v1967_v15 = vpop.eup %1966  ;;  %v1088_v17 = vand.u32 2147483648, %v2640_v26  ;;  %vm1092_vm10 = vcmp.eq.f32.partialorder %v2645_v39, inf  ;;  %v2743_v41 = vsel %vm1045_vm13, %v1046_v43, %v1044_v47  ;;  %v1070_v35 = vmul.f32 %v1963_v12, %v2630_v44 }
  0xf2   :  { %v1969_v53 = vpop.eup %1968  ;;  %v1095_v19 = vand.u32 2147483648, %v2645_v39  ;;  %vm1099_vm11 = vcmp.eq.f32.partialorder %v2651_v10, inf  ;;  %v2751_v16 = vsel %vm1052_vm15, %v1053_v18, %v1051_v54  ;;  %v1058_v40 = vsel %vm1057_vm0, %v2616_v46, %v1056_v6 }
  0xf3   :  { %v1971_v14 = vpop.eup %1970  ;;  %vm1101_vm13 = vcmp.eq.f32.partialorder %v2651_v10, 0.0  ;;  %v1102_v7 = vand.u32 2147483648, %v2651_v10  ;;  %v1077_v12 = vmul.f32 %v1965_v24, %v2635_v13  ;;  %vm1106_vm14 = vcmp.eq.f32.partialorder %v2656_v34, inf }
  0xf4   :  { %v1973_v43 = vpop.eup %1972  ;;  %vm1108_vm12 = vcmp.eq.f32.partialorder %v2656_v34, 0.0  ;;  %v1109_v47 = vand.u32 2147483648, %v2656_v34  ;;  %v1065_v11 = vsel %vm1064_vm2, %v2624_v23, %v1063_v38  ;;  %v1084_v18 = vmul.f32 %v1967_v15, %v2640_v26 }
  0xf5   :  { %v1111_v6 = vmul.f32 -0.007784894, %v2676_v21  ;;  %v1112_v54 = vmul.f32 -0.007784894, %v2685_v55  ;;  %v2770_v33 = vsel %vm1059_vm1, %v1060_v50, %v1058_v40  ;;  %v1072_v24 = vsel %vm1071_vm4, %v2630_v44, %v1070_v35 }
  0xf6   :  { %v1091_v5 = vmul.f32 %v1969_v53, %v2645_v39  ;;  %v1113_v32 = vmul.f32 -0.007784894, %v2698_v25  ;;  %v1098_v38 = vmul.f32 %v1971_v14, %v2651_v10  ;;  %v1105_v15 = vmul.f32 %v1973_v43, %v2656_v34 }
  0xf7   :  { %v1114_v28 = vmul.f32 -0.007784894, %v2707_v1  ;;  %v1115_v30 = vmul.f32 -0.007784894, %v2720_v48  ;;  %v2783_v46 = vsel %vm1066_vm3, %v1067_v58, %v1065_v11  ;;  %v1079_v35 = vsel %vm1078_vm6, %v2635_v13, %v1077_v12 }
  0xf8   :  { %v1116_v50 = vmul.f32 -0.007784894, %v2735_v51  ;;  %v1117_v53 = vmul.f32 -0.007784894, %v2743_v41  ;;  %v2792_v14 = vsel %vm1073_vm5, %v1074_v22, %v1072_v24  ;;  %v1086_v40 = vsel %vm1085_vm8, %v2640_v26, %v1084_v18 }
  0xf9   :  { %v1118_v23 = vmul.f32 -0.007784894, %v2751_v16  ;;  %v1119_v58 = vmul.f32 -0.007784894, %v2770_v33  ;;  %v1093_v43 = vsel %vm1092_vm10, %v2645_v39, %v1091_v5  ;;  %v1120_v12 = vmul.f32 -0.007784894, %v2783_v46 }
  0xfa   :  { %v1121_v11 = vmul.f32 -0.007784894, %v2792_v14  ;;  %v1127_v59 = vadd.f32 -0.32239646, %v1111_v6  ;;  %v2806_v44 = vsel %vm1080_vm7, %v1081_v49, %v1079_v35  ;;  %v1100_v22 = vsel %vm1099_vm11, %v2651_v10, %v1098_v38 }
  0xfb   :  { %v1107_v18 = vsel %vm1106_vm14, %v2656_v34, %v1105_v15  ;;  %v1128_v24 = vadd.f32 -0.32239646, %v1112_v54  ;;  %v2816_v5 = vsel %vm1087_vm9, %v1088_v17, %v1086_v40  ;;  %v1122_v37 = vmul.f32 -0.007784894, %v2806_v44 }
  0xfc   :  { %v1129_v6 = vadd.f32 -0.32239646, %v1113_v32  ;;  %v1130_v45 = vadd.f32 -0.32239646, %v1114_v28  ;;  %vm3370_vm15 = vcmp.eq.f32.partialorder %v2645_v39, 0.0  ;;  %v2826_v15 = vsel %vm1101_vm13, %v1102_v7, %v1100_v22 }
  0xfd   :  { %v2821_v49 = vsel %vm3370_vm15, %v1095_v19, %v1093_v43  ;;  %v1123_v13 = vmul.f32 -0.007784894, %v2816_v5  ;;  %v1131_v38 = vadd.f32 -0.32239646, %v1115_v30  ;;  %v1132_v35 = vadd.f32 -0.32239646, %v1116_v50 }
  0xfe   :  { %v2830_v26 = vsel %vm1108_vm12, %v1109_v47, %v1107_v18  ;;  %v1124_v17 = vmul.f32 -0.007784894, %v2821_v49  ;;  %v1133_v32 = vadd.f32 -0.32239646, %v1117_v53  ;;  %v2835_v28 = vmul.f32 %v2543_v20, %v2553_v36 }
  0xff   :  { %v1125_v39 = vmul.f32 -0.007784894, %v2826_v15  ;;  %v1126_v30 = vmul.f32 -0.007784894, %v2830_v26  ;;  %v1134_v19 = vadd.f32 -0.32239646, %v1118_v23  ;;  %v1143_v7 = vmul.f32 %v1127_v59, %v2676_v21 }
 0x100   :  { %3371 = vst [vmem:[#allocation26_spill] sm:$0xff] %v2835_v28  ;;  %v1135_v54 = vadd.f32 -0.32239646, %v1119_v58  ;;  %v1136_v10 = vadd.f32 -0.32239646, %v1120_v12  ;;  %v1144_v34 = vmul.f32 %v1128_v24, %v2685_v55  ;;  %v1145_v40 = vmul.f32 %v1129_v6, %v2698_v25 }
 0x101   :  { %v1137_v47 = vadd.f32 -0.32239646, %v1121_v11  ;;  %v1138_v50 = vadd.f32 -0.32239646, %v1122_v37  ;;  %v1146_v53 = vmul.f32 %v1130_v45, %v2707_v1  ;;  %v1139_v43 = vadd.f32 -0.32239646, %v1123_v13 }
 0x102   :  { %v1140_v20 = vadd.f32 -0.32239646, %v1124_v17  ;;  %v1147_v36 = vmul.f32 %v1131_v38, %v2720_v48  ;;  %v1148_v22 = vmul.f32 %v1132_v35, %v2735_v51  ;;  %v1141_v18 = vadd.f32 -0.32239646, %v1125_v39 }
 0x103   :  { %v1142_v23 = vadd.f32 -0.32239646, %v1126_v30  ;;  %v1149_v58 = vmul.f32 %v1133_v32, %v2743_v41  ;;  %v1150_v59 = vmul.f32 %v1134_v19, %v2751_v16  ;;  %v1151_v12 = vmul.f32 %v1135_v54, %v2770_v33 }
 0x104   :  { %v1152_v37 = vmul.f32 %v1136_v10, %v2783_v46  ;;  %v1159_v11 = vadd.f32 -2.4007583, %v1143_v7  ;;  %v1160_v24 = vadd.f32 -2.4007583, %v1144_v34  ;;  %v1153_v45 = vmul.f32 %v1137_v47, %v2792_v14 }
 0x105   :  { %v1154_v6 = vmul.f32 %v1138_v50, %v2806_v44  ;;  %v1161_v13 = vadd.f32 -2.4007583, %v1145_v40  ;;  %v1162_v38 = vadd.f32 -2.4007583, %v1146_v53  ;;  %v1155_v35 = vmul.f32 %v1139_v43, %v2816_v5 }
 0x106   :  { %v1156_v17 = vmul.f32 %v1140_v20, %v2821_v49  ;;  %v1163_v39 = vadd.f32 -2.4007583, %v1147_v36  ;;  %v1164_v32 = vadd.f32 -2.4007583, %v1148_v22  ;;  %v1157_v30 = vmul.f32 %v1141_v18, %v2826_v15 }
 0x107   :  { %v1158_v19 = vmul.f32 %v1142_v23, %v2830_v26  ;;  %v1165_v54 = vadd.f32 -2.4007583, %v1149_v58  ;;  %v1166_v10 = vadd.f32 -2.4007583, %v1150_v59  ;;  %v1167_v7 = vadd.f32 -2.4007583, %v1151_v12 }
 0x108   :  { %v1168_v34 = vadd.f32 -2.4007583, %v1152_v37  ;;  %v1175_v47 = vmul.f32 %v1159_v11, %v2676_v21  ;;  %v1176_v50 = vmul.f32 %v1160_v24, %v2685_v55  ;;  %v1169_v40 = vadd.f32 -2.4007583, %v1153_v45 }
 0x109   :  { %v1170_v53 = vadd.f32 -2.4007583, %v1154_v6  ;;  %v1177_v43 = vmul.f32 %v1161_v13, %v2698_v25  ;;  %v1178_v20 = vmul.f32 %v1162_v38, %v2707_v1  ;;  %v1171_v36 = vadd.f32 -2.4007583, %v1155_v35 }
 0x10a   :  { %v1172_v22 = vadd.f32 -2.4007583, %v1156_v17  ;;  %v1179_v18 = vmul.f32 %v1163_v39, %v2720_v48  ;;  %v1180_v23 = vmul.f32 %v1164_v32, %v2735_v51  ;;  %v1173_v58 = vadd.f32 -2.4007583, %v1157_v30 }
 0x10b   :  { %v1174_v59 = vadd.f32 -2.4007583, %v1158_v19  ;;  %v1181_v12 = vmul.f32 %v1165_v54, %v2743_v41  ;;  %v1182_v37 = vmul.f32 %v1166_v10, %v2751_v16  ;;  %v1183_v11 = vmul.f32 %v1167_v7, %v2770_v33 }
 0x10c   :  { %v1184_v24 = vmul.f32 %v1168_v34, %v2783_v46  ;;  %v1191_v45 = vadd.f32 -2.5497324, %v1175_v47  ;;  %v1192_v6 = vadd.f32 -2.5497324, %v1176_v50  ;;  %v1185_v13 = vmul.f32 %v1169_v40, %v2792_v14 }
 0x10d   :  { %v1186_v38 = vmul.f32 %v1170_v53, %v2806_v44  ;;  %v1193_v35 = vadd.f32 -2.5497324, %v1177_v43  ;;  %v1194_v17 = vadd.f32 -2.5497324, %v1178_v20  ;;  %v1187_v39 = vmul.f32 %v1171_v36, %v2816_v5 }
 0x10e   :  { %v1188_v32 = vmul.f32 %v1172_v22, %v2821_v49  ;;  %v1195_v30 = vadd.f32 -2.5497324, %v1179_v18  ;;  %v1196_v19 = vadd.f32 -2.5497324, %v1180_v23  ;;  %v1189_v54 = vmul.f32 %v1173_v58, %v2826_v15 }
 0x10f   :  { %v1190_v10 = vmul.f32 %v1174_v59, %v2830_v26  ;;  %v1197_v7 = vadd.f32 -2.5497324, %v1181_v12  ;;  %v1198_v34 = vadd.f32 -2.5497324, %v1182_v37  ;;  %v1199_v47 = vadd.f32 -2.5497324, %v1183_v11 }
 0x110   :  { %v1200_v50 = vadd.f32 -2.5497324, %v1184_v24  ;;  %v1207_v40 = vmul.f32 %v1191_v45, %v2676_v21  ;;  %v1208_v53 = vmul.f32 %v1192_v6, %v2685_v55  ;;  %v1201_v43 = vadd.f32 -2.5497324, %v1185_v13 }
 0x111   :  { %v1202_v20 = vadd.f32 -2.5497324, %v1186_v38  ;;  %v1209_v36 = vmul.f32 %v1193_v35, %v2698_v25  ;;  %v1210_v22 = vmul.f32 %v1194_v17, %v2707_v1  ;;  %v1203_v18 = vadd.f32 -2.5497324, %v1187_v39 }
 0x112   :  { %v1204_v23 = vadd.f32 -2.5497324, %v1188_v32  ;;  %v1211_v58 = vmul.f32 %v1195_v30, %v2720_v48  ;;  %v1212_v59 = vmul.f32 %v1196_v19, %v2735_v51  ;;  %v1205_v12 = vadd.f32 -2.5497324, %v1189_v54 }
 0x113   :  { %v1206_v37 = vadd.f32 -2.5497324, %v1190_v10  ;;  %v1213_v11 = vmul.f32 %v1197_v7, %v2743_v41  ;;  %v1214_v24 = vmul.f32 %v1198_v34, %v2751_v16  ;;  %v1215_v45 = vmul.f32 %v1199_v47, %v2770_v33 }
 0x114   :  { %v1216_v6 = vmul.f32 %v1200_v50, %v2783_v46  ;;  %v1223_v13 = vadd.f32 4.3746643, %v1207_v40  ;;  %v1224_v38 = vadd.f32 4.3746643, %v1208_v53  ;;  %v1217_v35 = vmul.f32 %v1201_v43, %v2792_v14 }
 0x115   :  { %v1218_v17 = vmul.f32 %v1202_v20, %v2806_v44  ;;  %v1225_v39 = vadd.f32 4.3746643, %v1209_v36  ;;  %v1226_v32 = vadd.f32 4.3746643, %v1210_v22  ;;  %v1219_v30 = vmul.f32 %v1203_v18, %v2816_v5 }
 0x116   :  { %v1220_v19 = vmul.f32 %v1204_v23, %v2821_v49  ;;  %v1227_v54 = vadd.f32 4.3746643, %v1211_v58  ;;  %v1228_v10 = vadd.f32 4.3746643, %v1212_v59  ;;  %v1221_v7 = vmul.f32 %v1205_v12, %v2826_v15 }
 0x117   :  { %v1222_v34 = vmul.f32 %v1206_v37, %v2830_v26  ;;  %v1229_v47 = vadd.f32 4.3746643, %v1213_v11  ;;  %v1230_v50 = vadd.f32 4.3746643, %v1214_v24  ;;  %v1231_v40 = vadd.f32 4.3746643, %v1215_v45 }
 0x118   :  { %v1232_v53 = vadd.f32 4.3746643, %v1216_v6  ;;  %v1239_v43 = vmul.f32 %v1223_v13, %v2676_v21  ;;  %v1240_v20 = vmul.f32 %v1224_v38, %v2685_v55  ;;  %v1233_v36 = vadd.f32 4.3746643, %v1217_v35 }
 0x119   :  { %v1234_v22 = vadd.f32 4.3746643, %v1218_v17  ;;  %v1241_v18 = vmul.f32 %v1225_v39, %v2698_v25  ;;  %v1242_v23 = vmul.f32 %v1226_v32, %v2707_v1  ;;  %v1235_v58 = vadd.f32 4.3746643, %v1219_v30 }
 0x11a   :  { %v1236_v59 = vadd.f32 4.3746643, %v1220_v19  ;;  %v1243_v12 = vmul.f32 %v1227_v54, %v2720_v48  ;;  %v1244_v37 = vmul.f32 %v1228_v10, %v2735_v51  ;;  %v1237_v11 = vadd.f32 4.3746643, %v1221_v7 }
 0x11b   :  { %v1238_v24 = vadd.f32 4.3746643, %v1222_v34  ;;  %v1245_v45 = vmul.f32 %v1229_v47, %v2743_v41  ;;  %v1246_v6 = vmul.f32 %v1230_v50, %v2751_v16  ;;  %v1247_v13 = vmul.f32 %v1231_v40, %v2770_v33 }
 0x11c   :  { %v1248_v38 = vmul.f32 %v1232_v53, %v2783_v46  ;;  %v2897_v35 = vadd.f32 2.938164, %v1239_v43  ;;  %v2899_v17 = vadd.f32 2.938164, %v1240_v20  ;;  %v1249_v39 = vmul.f32 %v1233_v36, %v2792_v14 }
 0x11d   :  { %v2902_v32 = vadd.f32 2.938164, %v1241_v18  ;;  %v2904_v30 = vadd.f32 2.938164, %v1242_v23  ;;  %v1271_v19 = vmul.f32 0.007784696, %v2676_v21  ;;  %v1250_v54 = vmul.f32 %v1234_v22, %v2806_v44 }
 0x11e   :  { %3372 = vst [vmem:[#allocation27_spill] sm:$0xff] %v2899_v17  ;;  %v2908_v10 = vadd.f32 2.938164, %v1243_v12  ;;  %v2910_v7 = vadd.f32 2.938164, %v1244_v37  ;;  %v1251_v47 = vmul.f32 %v1235_v58, %v2816_v5  ;;  %v2921_v43 = vmul.f32 %v2550_v52, %v2556_v29 }
 0x11f   :  { %3373 = vst [vmem:[#allocation37_spill] sm:$0xff] %v2902_v32  ;;  %3374 = vst [vmem:[#allocation41_spill] sm:$0xff] %v2904_v30  ;;  %v1272_v34 = vmul.f32 0.007784696, %v2685_v55  ;;  %v2914_v50 = vadd.f32 2.938164, %v1245_v45  ;;  %v2930_v18 = vmul.f32 %v2628_v9, %v2560_v8  ;;  %v2936_v37 = vmul.f32 %v1236_v59, %v2821_v49 }
 0x120   :  { %3375 = vst [vmem:[#allocation42_spill] sm:$0xff] %v2908_v10  ;;  %3376 = vst [vmem:[#allocation43_spill] sm:$0xff] %v2910_v7  ;;  %v2916_v40 = vadd.f32 2.938164, %v1246_v6  ;;  %v1273_v53 = vmul.f32 0.007784696, %v2698_v25  ;;  %v2942_v6 = vmul.f32 %v1237_v11, %v2826_v15 }
 0x121   :  { %3377 = vst [vmem:[#allocation44_spill] sm:$0xff] %v2914_v50  ;;  %3379 = vst [vmem:[#allocation46_spill] sm:$0xff] %v2921_v43  ;;  %v2923_v20 = vadd.f32 2.938164, %v1247_v13  ;;  %v2925_v36 = vadd.f32 2.938164, %v1248_v38  ;;  %v2948_v38 = vmul.f32 %v1238_v24, %v2830_v26 }
 0x122   :  { %3378 = vst [vmem:[#allocation45_spill] sm:$0xff] %v2916_v40  ;;  %v1274_v22 = vmul.f32 0.007784696, %v2707_v1  ;;  %3382 = vst [vmem:[#allocation49_spill] sm:$0xff] %v2930_v18  ;;  %v2932_v23 = vadd.f32 2.938164, %v1249_v39 }
 0x123   :  { %3380 = vst [vmem:[#allocation47_spill] sm:$0xff] %v2923_v20  ;;  %3381 = vst [vmem:[#allocation48_spill] sm:$0xff] %v2925_v36  ;;  %v1275_v58 = vmul.f32 0.007784696, %v2720_v48  ;;  %v1287_v12 = vadd.f32 0.32246712, %v1271_v19 }
 0x124   :  { %3383 = vst [vmem:[#allocation50_spill] sm:$0xff] %v2932_v23  ;;  %v2938_v52 = vadd.f32 2.938164, %v1250_v54  ;;  %v1276_v29 = vmul.f32 0.007784696, %v2735_v51  ;;  %vm1431_vm0 = vcmp.lt.f32.partialorder %v2049_v60, 0.5 }
 0x125   :  { %v1288_v45 = vadd.f32 0.32246712, %v1272_v34  ;;  %v2944_v13 = vadd.f32 2.938164, %v1251_v47  ;;  %v1277_v8 = vmul.f32 0.007784696, %v2743_v41  ;;  %v1303_v11 = vmul.f32 %v1287_v12, %v2676_v21 }
 0x126   :  { %3384 = vst [vmem:[#allocation51_spill] sm:$0xff] %v2938_v52  ;;  %v1289_v9 = vadd.f32 0.32246712, %v1273_v53  ;;  %v1278_v39 = vmul.f32 0.007784696, %v2751_v16  ;;  %vm1432_vm1 = vcmp.lt.f32.partialorder %v2051_v61, 0.5 }
 0x127   :  { %3385 = vst [vmem:[#allocation52_spill] sm:$0xff] %v2944_v13  ;;  %v1279_v59 = vmul.f32 0.007784696, %v2770_v33  ;;  %v1290_v19 = vadd.f32 0.32246712, %v1274_v22  ;;  %v1304_v24 = vmul.f32 %v1288_v45, %v2685_v55  ;;  %vm1433_vm2 = vcmp.lt.f32.partialorder %v2053_v62, 0.5 }
 0x128   :  { %v1280_v54 = vmul.f32 0.007784696, %v2783_v46  ;;  %v1281_v34 = vmul.f32 0.007784696, %v2792_v14  ;;  %v1291_v18 = vadd.f32 0.32246712, %v1275_v58  ;;  %v1305_v22 = vmul.f32 %v1289_v9, %v2698_v25 }
 0x129   :  { %v1282_v47 = vmul.f32 0.007784696, %v2806_v44  ;;  %v1283_v43 = vmul.f32 0.007784696, %v2816_v5  ;;  %v1292_v53 = vadd.f32 0.32246712, %v1276_v29  ;;  %v1306_v12 = vmul.f32 %v1290_v19, %v2707_v1 }
 0x12a   :  { %v1284_v28 = vmul.f32 0.007784696, %v2821_v49  ;;  %v1285_v13 = vmul.f32 0.007784696, %v2826_v15  ;;  %v1293_v52 = vadd.f32 0.32246712, %v1277_v8  ;;  %v1307_v4 = vmul.f32 %v1291_v18, %v2720_v48 }
 0x12b   :  { %v1286_v23 = vmul.f32 0.007784696, %v2830_v26  ;;  %v1294_v36 = vadd.f32 0.32246712, %v1278_v39  ;;  %v1295_v58 = vadd.f32 0.32246712, %v1279_v59  ;;  %v1308_v7 = vmul.f32 %v1292_v53, %v2735_v51 }
 0x12c   :  { %v1296_v20 = vadd.f32 0.32246712, %v1280_v54  ;;  %v1297_v40 = vadd.f32 0.32246712, %v1281_v34  ;;  %v1319_v29 = vadd.f32 2.4451342, %v1303_v11  ;;  %v1309_v9 = vmul.f32 %v1293_v52, %v2743_v41 }
 0x12d   :  { %v1298_v50 = vadd.f32 0.32246712, %v1282_v47  ;;  %v1299_v45 = vadd.f32 0.32246712, %v1283_v43  ;;  %v1320_v10 = vadd.f32 2.4451342, %v1304_v24  ;;  %v1310_v39 = vmul.f32 %v1294_v36, %v2751_v16 }
 0x12e   :  { %v1300_v30 = vadd.f32 0.32246712, %v1284_v28  ;;  %v1301_v8 = vadd.f32 0.32246712, %v1285_v13  ;;  %v1321_v32 = vadd.f32 2.4451342, %v1305_v22  ;;  %v1311_v59 = vmul.f32 %v1295_v58, %v2770_v33 }
 0x12f   :  { %v1302_v17 = vadd.f32 0.32246712, %v1286_v23  ;;  %v1322_v19 = vadd.f32 2.4451342, %v1306_v12  ;;  %v1312_v54 = vmul.f32 %v1296_v20, %v2783_v46  ;;  %v1313_v18 = vmul.f32 %v1297_v40, %v2792_v14  ;;  %v3407_v61 = vld [vmem:[#allocation34_spill] sm:$0xff] }
 0x130   :  { %v1323_v34 = vadd.f32 2.4451342, %v1307_v4  ;;  %v1335_v43 = vmul.f32 %v1319_v29, %v2676_v21  ;;  %v1314_v11 = vmul.f32 %v1298_v50, %v2806_v44  ;;  %v1315_v28 = vmul.f32 %v1299_v45, %v2816_v5 }
 0x131   :  { %v1324_v13 = vadd.f32 2.4451342, %v1308_v7  ;;  %v1336_v52 = vmul.f32 %v1320_v10, %v2685_v55  ;;  %v1316_v23 = vmul.f32 %v1300_v30, %v2821_v49  ;;  %v1317_v36 = vmul.f32 %v1301_v8, %v2826_v15 }
 0x132   :  { %v1325_v47 = vadd.f32 2.4451342, %v1309_v9  ;;  %v1337_v53 = vmul.f32 %v1321_v32, %v2698_v25  ;;  %v1318_v20 = vmul.f32 %v1302_v17, %v2830_v26  ;;  %v1326_v40 = vadd.f32 2.4451342, %v1310_v39 }
 0x133   :  { %v1327_v4 = vadd.f32 2.4451342, %v1311_v59  ;;  %v1338_v24 = vmul.f32 %v1322_v19, %v2707_v1  ;;  %v1328_v22 = vadd.f32 2.4451342, %v1312_v54  ;;  %v1329_v50 = vadd.f32 2.4451342, %v1313_v18 }
 0x134   :  { %v1339_v58 = vmul.f32 %v1323_v34, %v2720_v48  ;;  %v1351_v7 = vadd.f32 3.7544086, %v1335_v43  ;;  %v1330_v12 = vadd.f32 2.4451342, %v1314_v11  ;;  %v1331_v10 = vadd.f32 2.4451342, %v1315_v28 }
 0x135   :  { %v1340_v30 = vmul.f32 %v1324_v13, %v2735_v51  ;;  %v1352_v29 = vadd.f32 3.7544086, %v1336_v52  ;;  %v1332_v45 = vadd.f32 2.4451342, %v1316_v23  ;;  %v1333_v8 = vadd.f32 2.4451342, %v1317_v36 }
 0x136   :  { %v1341_v32 = vmul.f32 %v1325_v47, %v2743_v41  ;;  %v1353_v9 = vadd.f32 3.7544086, %v1337_v53  ;;  %v1334_v17 = vadd.f32 2.4451342, %v1318_v20  ;;  %v1342_v39 = vmul.f32 %v1326_v40, %v2751_v16 }
 0x137   :  { %v1343_v59 = vmul.f32 %v1327_v4, %v2770_v33  ;;  %v1354_v19 = vadd.f32 3.7544086, %v1338_v24  ;;  %v1344_v54 = vmul.f32 %v1328_v22, %v2783_v46  ;;  %v1345_v18 = vmul.f32 %v1329_v50, %v2792_v14 }
 0x138   :  { %v1355_v34 = vadd.f32 3.7544086, %v1339_v58  ;;  %v1367_v43 = vmul.f32 %v1351_v7, %v2676_v21  ;;  %v1346_v11 = vmul.f32 %v1330_v12, %v2806_v44  ;;  %v1347_v28 = vmul.f32 %v1331_v10, %v2816_v5 }
 0x139   :  { %v1356_v13 = vadd.f32 3.7544086, %v1340_v30  ;;  %v1368_v52 = vmul.f32 %v1352_v29, %v2685_v55  ;;  %v1348_v23 = vmul.f32 %v1332_v45, %v2821_v49  ;;  %v1349_v36 = vmul.f32 %v1333_v8, %v2826_v15 }
 0x13a   :  { %v1357_v47 = vadd.f32 3.7544086, %v1341_v32  ;;  %v1369_v53 = vmul.f32 %v1353_v9, %v2698_v25  ;;  %v1350_v20 = vmul.f32 %v1334_v17, %v2830_v26  ;;  %v1358_v40 = vadd.f32 3.7544086, %v1342_v39 }
 0x13b   :  { %v1359_v4 = vadd.f32 3.7544086, %v1343_v59  ;;  %v1370_v21 = vmul.f32 %v1354_v19, %v2707_v1  ;;  %v1360_v24 = vadd.f32 3.7544086, %v1344_v54  ;;  %v1361_v22 = vadd.f32 3.7544086, %v1345_v18 }
 0x13c   :  { %v1371_v50 = vmul.f32 %v1355_v34, %v2720_v48  ;;  %v1383_v58 = vadd.f32 1.0, %v1367_v43  ;;  %v1362_v7 = vadd.f32 3.7544086, %v1346_v11  ;;  %v1363_v55 = vadd.f32 3.7544086, %v1347_v28 }
 0x13d   :  { %v1372_v12 = vmul.f32 %v1356_v13, %v2735_v51  ;;  %v1384_v10 = vadd.f32 1.0, %v1368_v52  ;;  %v1364_v30 = vadd.f32 3.7544086, %v1348_v23  ;;  %v1365_v29 = vadd.f32 3.7544086, %v1349_v36  ;;  %v3386_v52 = vld [vmem:[#allocation5_spill] sm:$0xff] }
 0x13e   :  { %v1373_v25 = vmul.f32 %v1357_v47, %v2743_v41  ;;  %v1385_v45 = vadd.f32 1.0, %v1369_v53  ;;  %v1366_v8 = vadd.f32 3.7544086, %v1350_v20  ;;  %v1374_v32 = vmul.f32 %v1358_v40, %v2751_v16  ;;  %v3387_v23 = vld [vmem:[#allocation38_spill] sm:$0xff]  ;;  %v3388_v36 = vld [vmem:[#allocation4_spill] sm:$0xff]  ;;  %v3389_v20 = vld [vmem:[#allocation27_spill] sm:$0xff] }
 0x13f   :  { %v1375_v1 = vmul.f32 %v1359_v4, %v2770_v33  ;;  %v1386_v9 = vadd.f32 1.0, %v1370_v21  ;;  %v1376_v17 = vmul.f32 %v1360_v24, %v2783_v46  ;;  %v1377_v48 = vmul.f32 %v1361_v22, %v2792_v14  ;;  %v3390_v4 = vld [vmem:[#allocation6_spill] sm:$0xff]  ;;  %v3391_v21 = vld [vmem:[#allocation39_spill] sm:$0xff] }
 0x140   :  { %v1387_v39 = vadd.f32 1.0, %v1371_v50  ;;  %1974 = vrcp.f32 %v1383_v58  ;;  %v1378_v51 = vmul.f32 %v1362_v7, %v2806_v44  ;;  %v1379_v59 = vmul.f32 %v1363_v55, %v2816_v5  ;;  %v3392_v50 = vld [vmem:[#allocation37_spill] sm:$0xff]  ;;  %v3393_v58 = vld [vmem:[#allocation7_spill] sm:$0xff]  ;;  %v3394_v55 = vld [vmem:[#allocation40_spill] sm:$0xff] }
 0x141   :  { %v1388_v19 = vadd.f32 1.0, %v1372_v12  ;;  %1976 = vrcp.f32 %v1384_v10  ;;  %v1380_v41 = vmul.f32 %v1364_v30, %v2821_v49  ;;  %v1381_v54 = vmul.f32 %v1365_v29, %v2826_v15  ;;  %v3395_v30 = vld [vmem:[#allocation41_spill] sm:$0xff] }
 0x142   :  { %v1389_v16 = vadd.f32 1.0, %v1373_v25  ;;  %1978 = vrcp.f32 %v1385_v45  ;;  %v3007_v33 = vadd.f32 2.938164, %v2936_v37  ;;  %v1382_v46 = vmul.f32 %v1366_v8, %v2830_v26  ;;  %v3396_v25 = vld [vmem:[#allocation8_spill] sm:$0xff] }
 0x143   :  { %v1390_v14 = vadd.f32 1.0, %v1374_v32  ;;  %1980 = vrcp.f32 %v1386_v9  ;;  %v3011_v18 = vadd.f32 2.938164, %v2942_v6  ;;  %v3014_v44 = vadd.f32 2.938164, %v2948_v38  ;;  %v3031_v38 = vld [vmem:[%s3218_s1] sm:$0xff] }
 0x144   :  { %v1391_v5 = vadd.f32 1.0, %v1375_v1  ;;  %1982 = vrcp.f32 %v1387_v39  ;;  %v1392_v49 = vadd.f32 1.0, %v1376_v17  ;;  %v1393_v34 = vadd.f32 1.0, %v1377_v48  ;;  %v3397_v8 = vld [vmem:[#allocation28_spill] sm:$0xff]  ;;  %v3398_v9 = vld [vmem:[#allocation42_spill] sm:$0xff]  ;;  %v3399_v48 = vld [vmem:[#allocation9_spill] sm:$0xff] }
 0x145   :  { %v1394_v15 = vadd.f32 1.0, %v1378_v51  ;;  %1984 = vrcp.f32 %v1388_v19  ;;  %v1395_v43 = vadd.f32 1.0, %v1379_v59  ;;  %v1396_v11 = vadd.f32 1.0, %v1380_v41  ;;  %v3400_v59 = vld [vmem:[#allocation32_spill] sm:$0xff]  ;;  %v3401_v41 = vld [vmem:[#allocation43_spill] sm:$0xff] }
 0x146   :  { %v1397_v37 = vadd.f32 1.0, %v1381_v54  ;;  %1986 = vrcp.f32 %v1389_v16  ;;  %v1398_v28 = vadd.f32 1.0, %v1382_v46  ;;  %vm1434_vm3 = vcmp.lt.f32.partialorder %v2055_v63, 0.5  ;;  %v3402_v16 = vld [vmem:[#allocation10_spill] sm:$0xff]  ;;  %v3415_v63 = vld [vmem:[#allocation33_spill] sm:$0xff] }
 0x147   :  { %1988 = vrcp.f32 %v1390_v14  ;;  %vm1435_vm4 = vcmp.lt.f32.partialorder %v2057_v0, 0.5  ;;  %vm1436_vm5 = vcmp.lt.f32.partialorder %v2059_v2, 0.5  ;;  %vm1479_vm6 = vcmp.lt.f32.partialorder %v2384_v27, 0.02425  ;;  %v3412_v27 = vld [vmem:[#allocation47_spill] sm:$0xff]  ;;  %v3419_v0 = vld [vmem:[#allocation17_spill] sm:$0xff] }
 0x148   :  { %1990 = vrcp.f32 %v1391_v5  ;;  %vm1480_vm7 = vcmp.lt.f32.partialorder %v2391_v42, 0.02425  ;;  %vm1437_vm8 = vcmp.lt.f32.partialorder %v2061_v3, 0.5  ;;  %vm1481_vm9 = vcmp.lt.f32.partialorder %v2397_v56, 0.02425  ;;  %v3403_v5 = vld [vmem:[#allocation14_spill] sm:$0xff] }
 0x149   :  { %1992 = vrcp.f32 %v1392_v49  ;;  %vm1482_vm10 = vcmp.lt.f32.partialorder %v2403_v31, 0.02425  ;;  %v1515_v47 = vsub.s32 0, %v3388_v36  ;;  %v1519_v24 = vsub.s32 1, %v3388_v36  ;;  %v3404_v49 = vld [vmem:[#allocation29_spill] sm:$0xff] }
 0x14a   :  { %v1975_v26 = vpop.eup %1974  ;;  %1994 = vrcp.f32 %v1393_v34  ;;  %v1523_v12 = vsub.s32 2, %v3388_v36  ;;  %vm1442_vm13 = vcmp.lt.f32.partialorder %v3399_v48, 0.5  ;;  %vm1488_vm14 = vcmp.lt.f32.partialorder %v3400_v59, 0.02425 }
 0x14b   :  { %v1977_v6 = vpop.eup %1976  ;;  %v1400_v13 = vmul.f32 %v1975_v26, %v2897_v35  ;;  %1996 = vrcp.f32 %v1394_v15  ;;  %v3051_v32 = vrot.slane %v3031_v38, %v1515_v47  ;;  %vm1443_vm15 = vcmp.lt.f32.partialorder %v3402_v16, 0.5  ;;  %v3405_v15 = vld [vmem:[#allocation44_spill] sm:$0xff]  ;;  %v3161_v16 = vld [vmem:[%s3218_s1 + $0x8] sm:$0xff] }
 0x14c   :  { %v1979_v53 = vpop.eup %1978  ;;  %v1402_v40 = vmul.f32 %v1977_v6, %v3389_v20  ;;  %1998 = vrcp.f32 %v1395_v43  ;;  %vm1489_vm11 = vcmp.lt.f32.partialorder %v3403_v5, 0.02425  ;;  %vm1490_vm12 = vcmp.lt.f32.partialorder %v3404_v49, 0.02425  ;;  %v3409_v20 = vld [vmem:[#allocation12_spill] sm:$0xff]  ;;  %v3441_v49 = vld [vmem:[#allocation25_spill] sm:$0xff] }
 0x14d   :  { %v1981_v22 = vpop.eup %1980  ;;  %v1404_v35 = vmul.f32 %v1979_v53, %v3392_v50  ;;  %2000 = vrcp.f32 %v1396_v11  ;;  %v1447_v7 = vsub.f32 0.0, %v1400_v13  ;;  %v3067_v60 = vrot.slane %v3031_v38, %v1519_v24  ;;  %v3406_v11 = vld [vmem:[#allocation11_spill] sm:$0xff]  ;;  %v3410_v50 = vld [vmem:[#allocation30_spill] sm:$0xff] }
 0x14e   :  { %v1983_v10 = vpop.eup %1982  ;;  %v1406_v29 = vmul.f32 %v1981_v22, %v3395_v30  ;;  %2002 = vrcp.f32 %v1397_v37  ;;  %v1448_v45 = vsub.f32 0.0, %v1402_v40  ;;  %v3413_v30 = vld [vmem:[#allocation13_spill] sm:$0xff]  ;;  %v1524_v59 = vrot.slane %v3031_v38, %v1523_v12 }
 0x14f   :  { %v1985_v1 = vpop.eup %1984  ;;  %v1408_v17 = vmul.f32 %v1983_v10, %v3398_v9  ;;  %2004 = vrcp.f32 %v1398_v28  ;;  %v1449_v39 = vsub.f32 0.0, %v1404_v35  ;;  %v1463_v51 = vsel %vm1431_vm0, %v1400_v13, %v1447_v7  ;;  %v3408_v13 = vld [vmem:[#allocation45_spill] sm:$0xff]  ;;  %v3411_v7 = vld [vmem:[#allocation16_spill] sm:$0xff]  ;;  %v3414_v9 = vld [vmem:[#allocation31_spill] sm:$0xff] }
 0x150   :  { %v1987_v19 = vpop.eup %1986  ;;  %v1410_v54 = vmul.f32 %v1985_v1, %v3401_v41  ;;  %v1450_v46 = vsub.f32 0.0, %v1406_v29  ;;  %v1464_v14 = vsel %vm1432_vm1, %v1402_v40, %v1448_v45  ;;  %v3076_v26 = vsel %vm1479_vm6, %v1463_v51, %v3407_v61  ;;  %v3417_v51 = vld [vmem:[#allocation48_spill] sm:$0xff] }
 0x151   :  { %v1989_v34 = vpop.eup %1988  ;;  %v1412_v43 = vmul.f32 %v1987_v19, %v3405_v15  ;;  %v1451_v37 = vsub.f32 0.0, %v1408_v17  ;;  %v1465_v28 = vsel %vm1433_vm2, %v1404_v35, %v1449_v39  ;;  %vm1445_vm1 = vcmp.lt.f32.partialorder %v3409_v20, 0.5  ;;  %v3420_v15 = vld [vmem:[#allocation50_spill] sm:$0xff]  ;;  %v3421_v61 = vld [vmem:[#allocation36_spill] sm:$0xff] }
 0x152   :  { %v1991_v6 = vpop.eup %1990  ;;  %v1414_v53 = vmul.f32 %v1989_v34, %v3408_v13  ;;  %v1452_v40 = vsub.f32 0.0, %v1410_v54  ;;  %v1466_v22 = vsel %vm1434_vm3, %v1406_v29, %v1450_v46  ;;  %vm1491_vm0 = vcmp.lt.f32.partialorder %v3410_v50, 0.02425  ;;  %v3416_v29 = vld [vmem:[#allocation35_spill] sm:$0xff] }
 0x153   :  { %v3086_v62 = vsel %vm1480_vm7, %v1464_v14, %v3411_v7  ;;  %v1993_v35 = vpop.eup %1992  ;;  %v1416_v10 = vmul.f32 %v1991_v6, %v3412_v27  ;;  %vm1446_vm2 = vcmp.lt.f32.partialorder %v3413_v30, 0.5  ;;  %v1453_v45 = vsub.f32 0.0, %v1412_v43  ;;  %v3418_v14 = vld [vmem:[#allocation15_spill] sm:$0xff]  ;;  %v3427_v27 = vld [vmem:[#allocation52_spill] sm:$0xff] }
 0x154   :  { %v1467_v1 = vsel %vm1435_vm4, %v1408_v17, %v1451_v37  ;;  %vm1492_vm6 = vcmp.lt.f32.partialorder %v3414_v9, 0.02425  ;;  %vm1493_vm3 = vcmp.lt.f32.partialorder %v3415_v63, 0.02425  ;;  %v3097_v39 = vsel %vm1481_vm9, %v1465_v28, %v3416_v29  ;;  %v1995_v42 = vpop.eup %1994 }
 0x155   :  { %v1418_v19 = vmul.f32 %v1993_v35, %v3417_v51  ;;  %v1454_v41 = vsub.f32 0.0, %v1414_v53  ;;  %v1468_v46 = vsel %vm1436_vm5, %v1410_v54, %v1452_v40  ;;  %vm1494_vm7 = vcmp.lt.f32.partialorder %v3418_v14, 0.02425  ;;  %v1997_v34 = vpop.eup %1996  ;;  %v3423_v54 = vld [vmem:[#allocation51_spill] sm:$0xff] }
 0x156   :  { %v3106_v17 = vsel %vm1482_vm10, %v1466_v22, %v3419_v0  ;;  %v1420_v37 = vmul.f32 %v1995_v42, %v3420_v15  ;;  %v1455_v56 = vsub.f32 0.0, %v1416_v10  ;;  %v1469_v28 = vsel %vm1437_vm8, %v1412_v43, %v1453_v45  ;;  %v1999_v2 = vpop.eup %1998  ;;  %v3425_v22 = vld [vmem:[#allocation18_spill] sm:$0xff] }
 0x157   :  { %vm3422_vm4 = vcmp.lt.f32.partialorder %v2420_v57, 0.02425  ;;  %v1422_v13 = vmul.f32 %v1997_v34, %v3423_v54  ;;  %v1456_v40 = vsub.f32 0.0, %v1418_v19  ;;  %vm3424_vm5 = vcmp.lt.f32.partialorder %v3386_v52, 0.5  ;;  %v2001_v35 = vpop.eup %2000  ;;  %v3429_v57 = vld [vmem:[#allocation19_spill] sm:$0xff] }
 0x158   :  { %v1499_v6 = vsel %vm3422_vm4, %v1467_v1, %v3421_v61  ;;  %v1470_v31 = vsel %vm3424_vm5, %v1414_v53, %v1454_v41  ;;  %vm3426_vm9 = vcmp.lt.f32.partialorder %v3387_v23, 0.02425  ;;  %v1424_v29 = vmul.f32 %v1999_v2, %v3427_v27  ;;  %v2003_v1 = vpop.eup %2002  ;;  %v3432_v23 = vld [vmem:[#allocation20_spill] sm:$0xff] }
 0x159   :  { %v1500_v7 = vsel %vm3426_vm9, %v1468_v46, %v3425_v22  ;;  %v1457_v3 = vsub.f32 0.0, %v1420_v37  ;;  %vm3428_vm8 = vcmp.lt.f32.partialorder %v3390_v4, 0.5  ;;  %vm3430_vm10 = vcmp.lt.f32.partialorder %v3391_v21, 0.02425  ;;  %v2005_v41 = vpop.eup %2004  ;;  %v3435_v21 = vld [vmem:[#allocation21_spill] sm:$0xff] }
 0x15a   :  { %v1471_v43 = vsel %vm3428_vm8, %v1416_v10, %v1455_v56  ;;  %v1501_v45 = vsel %vm3430_vm10, %v1469_v28, %v3429_v57  ;;  %v1426_v42 = vmul.f32 %v2001_v35, %v3007_v33  ;;  %v1458_v52 = vsub.f32 0.0, %v1422_v13  ;;  %v3444_v35 = vld [vmem:[#allocation49_spill] sm:$0xff] }
 0x15b   :  { %vm3431_vm4 = vcmp.lt.f32.partialorder %v3393_v58, 0.5  ;;  %vm3433_vm5 = vcmp.lt.f32.partialorder %v3394_v55, 0.02425  ;;  %v1428_v46 = vmul.f32 %v2003_v1, %v3011_v18  ;;  %v1459_v4 = vsub.f32 0.0, %v1424_v29 }
 0x15c   :  { %v1472_v53 = vsel %vm3431_vm4, %v1418_v19, %v1456_v40  ;;  %v1502_v51 = vsel %vm3433_vm5, %v1470_v31, %v3432_v23  ;;  %vm3434_vm9 = vcmp.lt.f32.partialorder %v3396_v25, 0.5  ;;  %vm3436_vm8 = vcmp.lt.f32.partialorder %v3397_v8, 0.02425  ;;  %v3437_v19 = vld [vmem:[#allocation22_spill] sm:$0xff]  ;;  %v3438_v25 = vld [vmem:[#allocation23_spill] sm:$0xff]  ;;  %v3439_v8 = vld [vmem:[#allocation24_spill] sm:$0xff] }
 0x15d   :  { %v1473_v10 = vsel %vm3434_vm9, %v1420_v37, %v1457_v3  ;;  %v1503_v0 = vsel %vm3436_vm8, %v1471_v43, %v3435_v21  ;;  %v1430_v33 = vmul.f32 %v2005_v41, %v3014_v44  ;;  %v1460_v34 = vsub.f32 0.0, %v1426_v42  ;;  %v3443_v31 = vld [vmem:[#allocation46_spill] sm:$0xff] }
 0x15e   :  { %v1474_v58 = vsel %vm1442_vm13, %v1422_v13, %v1458_v52  ;;  %v1504_v55 = vsel %vm1488_vm14, %v1472_v53, %v3437_v19  ;;  %v1461_v15 = vsub.f32 0.0, %v1428_v46  ;;  %v1475_v18 = vsel %vm1443_vm15, %v1424_v29, %v1459_v4  ;;  %v3442_v13 = vld [vmem:[#allocation26_spill] sm:$0xff] }
 0x15f   :  { %v1505_v37 = vsel %vm1489_vm11, %v1473_v10, %v3438_v25  ;;  %v1506_v44 = vsel %vm1490_vm12, %v1474_v58, %v3439_v8  ;;  %v1462_v56 = vsub.f32 0.0, %v1430_v33  ;;  %vm3440_vm10 = vcmp.lt.f32.partialorder %v3406_v11, 0.5 }
 0x160   :  { %v1476_v48 = vsel %vm3440_vm10, %v1426_v42, %v1460_v34  ;;  %v1527_v28 = vsub.s32 3, %v3388_v36  ;;  %v1477_v5 = vsel %vm1445_vm1, %v1428_v46, %v1461_v15  ;;  %v1507_v61 = vsel %vm1491_vm0, %v1475_v18, %v3441_v49 }
 0x161   :  { %v1531_v11 = vsub.s32 4, %v3388_v36  ;;  %v1535_v2 = vsub.s32 5, %v3388_v36  ;;  %v1478_v54 = vsel %vm1446_vm2, %v1430_v33, %v1462_v56  ;;  %v1508_v40 = vsel %vm1492_vm6, %v1476_v48, %v3442_v13 }
 0x162   :  { %v1509_v20 = vsel %vm1493_vm3, %v1477_v5, %v3443_v31  ;;  %v1539_v22 = vsub.s32 6, %v3388_v36  ;;  %v1510_v50 = vsel %vm1494_vm7, %v1478_v54, %v3444_v35  ;;  %v1528_v27 = vrot.slane %v3031_v38, %v1527_v28 }
 0x163   :  { %v1532_v29 = vrot.slane %v3031_v38, %v1531_v11  ;;  %v1543_v30 = vsub.s32 7, %v3388_v36  ;;  %v1536_v3 = vrot.slane %v3031_v38, %v1535_v2  ;;  %v1548_v63 = vrot.slane %v3161_v16, %v1515_v47 }
 0x164   :  { %v1540_v9 = vrot.slane %v3031_v38, %v1539_v22  ;;  %v1552_v43 = vrot.slane %v3161_v16, %v1519_v24  ;;  %v1556_v57 = vrot.slane %v3161_v16, %v1523_v12  ;;  %v1560_v1 = vrot.slane %v3161_v16, %v1527_v28 }
 0x165   :  { %v1544_v14 = vrot.slane %v3031_v38, %v1543_v30  ;;  %v1564_v42 = vrot.slane %v3161_v16, %v1531_v11  ;;  %v1568_v52 = vrot.slane %v3161_v16, %v1535_v2  ;;  %v1572_v53 = vrot.slane %v3161_v16, %v1539_v22 }
 0x166   :  { %v1593_v47 = vmul.f32 %v3051_v32, %v3076_v26  ;;  %v1594_v24 = vmul.f32 %v3067_v60, %v3086_v62  ;;  %v1576_v23 = vrot.slane %v3161_v16, %v1543_v30  ;;  %v1595_v41 = vmul.f32 %v1524_v59, %v3097_v39 }
 0x167   :  { %v1596_v12 = vmul.f32 %v1528_v27, %v3106_v17  ;;  %v1597_v46 = vmul.f32 %v1532_v29, %v1499_v6  ;;  %v1598_v4 = vmul.f32 %v1536_v3, %v1500_v7  ;;  %v1599_v10 = vmul.f32 %v1540_v9, %v1501_v45 }
 0x168   :  { %v1600_v21 = vmul.f32 %v1544_v14, %v1502_v51  ;;  %v1601_v33 = vmul.f32 %v1548_v63, %v1503_v0  ;;  %v1602_v34 = vmul.f32 %v1552_v43, %v1504_v55  ;;  %v1603_v58 = vmul.f32 %v1556_v57, %v1505_v37 }
 0x169   :  { %v1604_v19 = vmul.f32 %v1560_v1, %v1506_v44  ;;  %v1605_v15 = vmul.f32 %v1564_v42, %v1507_v61  ;;  %v1606_v18 = vmul.f32 %v1568_v52, %v1508_v40  ;;  %v1607_v32 = vmul.f32 %v1572_v53, %v1509_v20 }
 0x16a   :  { %v1609_v26 = vmul.f32 0.1, %v1593_v47  ;;  %v1610_v25 = vmul.f32 0.1, %v1594_v24  ;;  %v1608_v60 = vmul.f32 %v1576_v23, %v1510_v50  ;;  %v1611_v62 = vmul.f32 0.1, %v1595_v41 }
 0x16b   :  { %v1612_v8 = vmul.f32 0.1, %v1596_v12  ;;  %v1613_v56 = vmul.f32 0.1, %v1597_v46  ;;  %v1614_v39 = vmul.f32 0.1, %v1598_v4 }
 0x16c   :  { %v1615_v48 = vmul.f32 0.1, %v1599_v10  ;;  %v1616_v17 = vmul.f32 0.1, %v1600_v21  ;;  %v1641_v6 = vcombine.low %v1609_v26, %v1610_v25  ;;  %v1617_v7 = vmul.f32 0.1, %v1601_v33 }
 0x16d   :  { %v1618_v45 = vmul.f32 0.1, %v1602_v34  ;;  %v1619_v51 = vmul.f32 0.1, %v1603_v58  ;;  %v1642_v0 = vcombine.low %v1611_v62, %v1612_v8  ;;  %v1620_v55 = vmul.f32 0.1, %v1604_v19 }
 0x16e   :  { %v1621_v37 = vmul.f32 0.1, %v1605_v15  ;;  %v1622_v44 = vmul.f32 0.1, %v1606_v18  ;;  %v1643_v59 = vcombine.low %v1613_v56, %v1614_v39  ;;  %v1623_v28 = vmul.f32 0.1, %v1607_v32 }
 0x16f   :  { %v1624_v5 = vmul.f32 0.1, %v1608_v60  ;;  %v1644_v49 = vcombine.low %v1615_v48, %v1616_v17  ;;  %v2006_v61 = vmov 1966171168   ;;  %v1690_v2 = vcombine.low %v1617_v7, %v1618_v45 }
 0x170   :  { %v1646_v11 = vunpack.c.l.s4 %v2006_v61  ;;  %v1691_v54 = vcombine.low %v1619_v51, %v1620_v55  ;;  %v1692_v13 = vcombine.low %v1621_v37, %v1622_v44 }
 0x171   :  { %v1693_v40 = vcombine.low %v1623_v28, %v1624_v5 }
 0x172   :  { %v1647_v31 = vunpack.c.0.s8 %v1646_v11 }
 0x174   :  { %v1650_v20 = vsub.s32 %v1647_v31, %v3388_v36 }
 0x176   :  { %v1651_v22 = vrot.slane %v1641_v6, %v1650_v20  ;;  %v1658_v35 = vrot.slane %v1642_v0, %v1650_v20  ;;  %v1665_v50 = vrot.slane %v1643_v59, %v1650_v20  ;;  %v1672_v27 = vrot.slane %v1644_v49, %v1650_v20 }
 0x177   :  { %v1700_v29 = vrot.slane %v1690_v2, %v1650_v20  ;;  %v1707_v30 = vrot.slane %v1691_v54, %v1650_v20  ;;  %v1714_v3 = vrot.slane %v1692_v13, %v1650_v20  ;;  %v1721_v9 = vrot.slane %v1693_v40, %v1650_v20 }
 0x178   :  { %v1673_v63 = vcombine.low %v1651_v22, %v1658_v35  ;;  %v1674_v43 = vcombine.low %v1665_v50, %v1672_v27 }
 0x179   :  { %v1722_v14 = vcombine.low %v1700_v29, %v1707_v30  ;;  %v1723_v57 = vcombine.low %v1714_v3, %v1721_v9 }
 0x17a   :  { %v1681_v1 = vrot.slane %v1673_v63, %v1650_v20  ;;  %v1688_v42 = vrot.slane %v1674_v43, %v1650_v20 }
 0x17b   :  { %v1730_v52 = vrot.slane %v1722_v14, %v1650_v20  ;;  %v1737_v53 = vrot.slane %v1723_v57, %v1650_v20 }
 0x17c   :  { %v1689_v47 = vcombine.low %v1681_v1, %v1688_v42 }
 0x17d   :  { %v1738_v24 = vcombine.low %v1730_v52, %v1737_v53 }
 0x17e   :  { %v1741_v36 = vadd.f32 %v1689_v47, %v3031_v38 }
 0x17f   :  { %v1742_v23 = vadd.f32 %v1738_v24, %v3161_v16 }
 0x180   :  { %1743 = vst [vmem:[%s3219_s2] sm:$0xff] %v1741_v36 }
 0x181   :  { %1744 = vst [vmem:[%s3219_s2 + $0x8] sm:$0xff] %v1742_v23 }

</bundles_post_ra>
